<compile_context>
chip_gen: v5e
topology: v5e:2x2
jax: 0.10.0
libtpu: 0.0.40
codegen_flags: <defaults>
</compile_context>

<pallas_src>
import functools

import jax
import jax.numpy as jnp
from jax.experimental import pallas as pl
from jax.experimental.pallas import tpu as pltpu


def _glimpse_kernel(x_ref, wih_ref, whh_ref, b_ref, wenc_ref, benc_ref,
                    starts_ref, out_ref, h_all_ref, *, selen, latent):
    """Fused touch+gaze LSTM encoder.

    x_ref     : (T, B, Dt+Dg)  time-major concatenated inputs
    wih_ref   : (Dt+Dg, 8L)    fused block-structured input weights
    whh_ref   : (2L, 8L)       fused block-diagonal hidden weights
    b_ref     : (1, 8L)        fused (b_ih + b_hh) biases
    wenc_ref  : (2L, 2L)       block-diagonal encoder Linear weights
    benc_ref  : (1, 2L)        encoder biases
    starts_ref: (B, 1) i32     per-batch attention-window start
    out_ref   : (B, 4L)        [touch_mean | touch_attn | gaze_mean | gaze_attn]
    h_all_ref : (T, B, 2L)     VMEM scratch holding every hidden state
    """
    T, B, dcat = x_ref.shape
    L = latent
    L2 = 2 * L

    # Hoisted input projection (+ bias) for all timesteps & both modalities.
    xg = jnp.dot(x_ref[...].reshape(T * B, dcat), wih_ref[...],
                 preferred_element_type=jnp.float32)            # (T*B, 8L)
    xg = (xg + b_ref[...]).reshape(T, B, 4 * L2)

    whh = whh_ref[...]                                          # (2L, 8L)

    # Fully unrolled serial recurrence; h/c live in vregs.
    h = jnp.zeros((B, L2), jnp.float32)
    c = jnp.zeros((B, L2), jnp.float32)
    for t in range(T):
        gates = xg[t] + jnp.dot(h, whh,
                                preferred_element_type=jnp.float32)  # (B, 8L)
        i_g = jax.nn.sigmoid(gates[:, 0 * L2:1 * L2])
        f_g = jax.nn.sigmoid(gates[:, 1 * L2:2 * L2])
        g_g = jnp.tanh(gates[:, 2 * L2:3 * L2])
        o_g = jax.nn.sigmoid(gates[:, 3 * L2:4 * L2])
        c = f_g * c + i_g * g_g
        h = o_g * jnp.tanh(c)
        h_all_ref[t] = h

    # Encoder: Linear(ReLU(h_t)) for all timesteps in one matmul.
    h_all = h_all_ref[...]                                      # (T, B, 2L)
    emb = (jnp.dot(jnp.maximum(h_all, 0.0).reshape(T * B, L2), wenc_ref[...],
                   preferred_element_type=jnp.float32)
           + benc_ref[...]).reshape(T, B, L2)

    # Full-sequence mean and per-batch windowed mean (vectorized over T).
    mean_emb = jnp.sum(emb, axis=0) * (1.0 / T)                 # (B, 2L)
    t_idx = jax.lax.broadcasted_iota(jnp.int32, (T, B, 1), 0)
    starts = starts_ref[...]                                    # (B, 1) i32
    in_win = (t_idx >= starts) & (t_idx < starts + selen)       # (T, B, 1)
    attn_emb = jnp.sum(jnp.where(in_win, emb, 0.0), axis=0) * (1.0 / selen)

    # Lane-dense (B, 4L) = (2, 128) output slab written once.
    out_ref[...] = jnp.concatenate(
        [mean_emb[:, :L], attn_emb[:, :L], mean_emb[:, L:], attn_emb[:, L:]],
        axis=-1)


def prepare_glimpse_params(params, latent):
    """One-time fusion / transposition of the per-modality PyTorch weights."""
    L = latent
    L2 = 2 * L
    d_t = params["t_w_ih"].shape[1]
    d_g = params["g_w_ih"].shape[1]

    wih_f = jnp.zeros((d_t + d_g, 4 * L2), jnp.float32)
    whh_f = jnp.zeros((L2, 4 * L2), jnp.float32)
    b_f = jnp.zeros((4 * L2,), jnp.float32)

    for pfx, d_off, h_off in (("t", 0, 0), ("g", d_t, L)):
        w_ih = params[f"{pfx}_w_ih"].astype(jnp.float32)        # (4L, D_m)
        w_hh = params[f"{pfx}_w_hh"].astype(jnp.float32)        # (4L, L)
        bias = (params[f"{pfx}_b_ih"]
                + params[f"{pfx}_b_hh"]).astype(jnp.float32)    # (4L,)
        d_m = w_ih.shape[1]
        for k in range(4):                                      # gate order i,f,g,o
            col = k * L2 + h_off
            wih_f = wih_f.at[d_off:d_off + d_m, col:col + L].set(
                w_ih[k * L:(k + 1) * L, :].T)
            whh_f = whh_f.at[h_off:h_off + L, col:col + L].set(
                w_hh[k * L:(k + 1) * L, :].T)
            b_f = b_f.at[col:col + L].set(bias[k * L:(k + 1) * L])

    wenc_f = jnp.zeros((L2, L2), jnp.float32)
    wenc_f = wenc_f.at[0:L, 0:L].set(params["t_w_enc"].astype(jnp.float32).T)
    wenc_f = wenc_f.at[L:L2, L:L2].set(params["g_w_enc"].astype(jnp.float32).T)
    benc_f = jnp.concatenate([params["t_b_enc"],
                              params["g_b_enc"]]).astype(jnp.float32)

    return {
        "wih": wih_f, "whh": whh_f, "b": b_f.reshape(1, 4 * L2),
        "wenc": wenc_f, "benc": benc_f.reshape(1, L2),
        "latent": L, "d_touch": d_t, "d_gaze": d_g,
    }


def glimpse_forward_pallas(touch_d, gaze_d, l, fused, selen):
    """Single fused pallas_call for both modalities."""
    B, T, _ = touch_d.shape
    L = fused["latent"]
    L2 = 2 * L

    x_cat = jnp.concatenate(
        [jnp.transpose(touch_d, (1, 0, 2)).astype(jnp.float32),
         jnp.transpose(gaze_d, (1, 0, 2)).astype(jnp.float32)],
        axis=-1)                                                # (T, B, Dt+Dg)
    dcat = x_cat.shape[-1]
    starts = (l.reshape(B, 1) * T).astype(jnp.int32)            # int() trunc

    kernel = functools.partial(_glimpse_kernel, selen=selen, latent=L)
    out = pl.pallas_call(
        kernel,
        out_shape=jax.ShapeDtypeStruct((B, 4 * L), jnp.float32),
        grid=(1,),
        in_specs=[
            pl.BlockSpec((T, B, dcat), lambda i: (0, 0, 0)),
            pl.BlockSpec((dcat, 4 * L2), lambda i: (0, 0)),
            pl.BlockSpec((L2, 4 * L2), lambda i: (0, 0)),
            pl.BlockSpec((1, 4 * L2), lambda i: (0, 0)),
            pl.BlockSpec((L2, L2), lambda i: (0, 0)),
            pl.BlockSpec((1, L2), lambda i: (0, 0)),
            pl.BlockSpec((B, 1), lambda i: (0, 0)),
        ],
        out_specs=pl.BlockSpec((B, 4 * L), lambda i: (0, 0)),
        scratch_shapes=[pltpu.VMEM((T, B, L2), jnp.float32)],
        compiler_params=pltpu.CompilerParams(
            dimension_semantics=("arbitrary",)),
    )(x_cat, fused["wih"], fused["whh"], fused["b"], fused["wenc"],
      fused["benc"], starts)
    return out


# ---------------- pure-JAX reference (PyTorch semantics, full f32) ----------
def _ref_branch(x_btd, w_ih, w_hh, b_ih, b_hh, w_enc, b_enc, starts, selen):
    B, T, D = x_btd.shape
    L = w_hh.shape[1]
    hi = jax.lax.Precision.HIGHEST

    def step(carry, x_t):
        h, c = carry
        gates = (jnp.dot(x_t, w_ih.T, precision=hi)
                 + jnp.dot(h, w_hh.T, precision=hi) + b_ih + b_hh)
        i, f, g, o = jnp.split(gates, 4, axis=-1)
        i, f, o = jax.nn.sigmoid(i), jax.nn.sigmoid(f), jax.nn.sigmoid(o)
        g = jnp.tanh(g)
        c = f * c + i * g
        h = o * jnp.tanh(c)
        return (h, c), h

    h0 = jnp.zeros((B, L), jnp.float32)
    (_, _), hs = jax.lax.scan(step, (h0, h0), jnp.transpose(x_btd, (1, 0, 2)))
    hs = jnp.transpose(hs, (1, 0, 2))                           # (B, T, L)
    emb = jnp.dot(jnp.maximum(hs, 0.0), w_enc.T, precision=hi) + b_enc
    emb_mean = emb.mean(axis=1)
    attn = jnp.stack([
        jax.lax.dynamic_slice_in_dim(emb[b], int(starts[b]), selen, 0).mean(0)
        for b in range(B)])
    return emb_mean, attn


def glimpse_forward_ref(touch_d, gaze_d, l, params, selen):
    T = touch_d.shape[1]
    starts = (l[:, 0] * T).astype(jnp.int32)
    t_mean, t_attn = _ref_branch(touch_d, params["t_w_ih"], params["t_w_hh"],
                                 params["t_b_ih"], params["t_b_hh"],
                                 params["t_w_enc"], params["t_b_enc"],
                                 starts, selen)
    g_mean, g_attn = _ref_branch(gaze_d, params["g_w_ih"], params["g_w_hh"],
                                 params["g_b_ih"], params["g_b_hh"],
                                 params["g_w_enc"], params["g_b_enc"],
                                 starts, selen)
    return jnp.concatenate([t_mean, t_attn, g_mean, g_attn], axis=-1)


def init_branch_params(key, in_dim, L, prefix):
    ks = jax.random.split(key, 6)
    s = 1.0 / float(jnp.sqrt(jnp.float32(L)))
    return {
        f"{prefix}_w_ih": jax.random.uniform(ks[0], (4 * L, in_dim),
                                             jnp.float32, -s, s),
        f"{prefix}_w_hh": jax.random.uniform(ks[1], (4 * L, L),
                                             jnp.float32, -s, s),
        f"{prefix}_b_ih": jax.random.uniform(ks[2], (4 * L,),
                                             jnp.float32, -s, s),
        f"{prefix}_b_hh": jax.random.uniform(ks[3], (4 * L,),
                                             jnp.float32, -s, s),
        f"{prefix}_w_enc": jax.random.uniform(ks[4], (L, L),
                                              jnp.float32, -s, s),
        f"{prefix}_b_enc": jax.random.uniform(ks[5], (L,),
                                              jnp.float32, -s, s),
    }


if __name__ == "__main__":
    # args: latent=32, selen=2, attention='sequential', model default
    BS, T = 2, 8
    LATENT = 32
    SELEN = 2
    TOUCH_INP, GAZE_INP = 3, 4

    key = jax.random.PRNGKey(0)
    k_touch, k_gaze, k_td, k_gd, k_l = jax.random.split(key, 5)

    params = {}
    params.update(init_branch_params(k_touch, TOUCH_INP, LATENT, "t"))
    params.update(init_branch_params(k_gaze, GAZE_INP, LATENT, "g"))

    # One-time fused-parameter preparation (transposes / block-diagonal packing).
    fused = prepare_glimpse_params(params, LATENT)
    fused = jax.tree_util.tree_map(
        lambda x: jax.block_until_ready(x) if isinstance(x, jax.Array) else x,
        fused)

    touch_d = jax.random.normal(k_td, (BS, T, TOUCH_INP), jnp.float32)
    gaze_d = jax.random.normal(k_gd, (BS, T, GAZE_INP), jnp.float32)
    # l chosen so int(T*l) + selen <= T (deterministic branch of the reference)
    l = jax.random.uniform(k_l, (BS, 1), jnp.float32, 0.0, 0.7)

    task_rep = glimpse_forward_pallas(touch_d, gaze_d, l, fused, SELEN)
    task_rep = jax.block_until_ready(task_rep)
    assert task_rep.shape == (BS, 4 * LATENT)

    # Reference runs at Precision.HIGHEST (true f32); the kernel uses default
    # (single-pass) MXU precision per the perf feedback, so the tolerance is
    # looser than the previous 1e-3 but still far below any semantic error.
    ref = glimpse_forward_ref(touch_d, gaze_d, l, params, SELEN)
    assert jnp.allclose(task_rep, ref, atol=2e-2, rtol=2e-2), (
        float(jnp.max(jnp.abs(task_rep - ref))))

    print("KERNEL_OK")
</pallas_src>

<mosaic_0001>
module attributes {stable_mosaic.version = 11 : i64} {
  func.func @_glimpse_kernel(%arg0: i32, %arg1: memref<8x2x7xf32, #tpu.memory_space<vmem>>, %arg2: memref<7x256xf32, #tpu.memory_space<vmem>>, %arg3: memref<64x256xf32, #tpu.memory_space<vmem>>, %arg4: memref<1x256xf32, #tpu.memory_space<vmem>>, %arg5: memref<64x64xf32, #tpu.memory_space<vmem>>, %arg6: memref<1x64xf32, #tpu.memory_space<vmem>>, %arg7: memref<2x1xi32, #tpu.memory_space<vmem>>, %arg8: memref<2x128xf32, #tpu.memory_space<vmem>>, %arg9: memref<8x2x64xf32, #tpu.memory_space<vmem>>) attributes {dimension_semantics = [#tpu.dimension_semantics<arbitrary>], iteration_bounds = array<i64: 1>, scalar_prefetch = 0 : i64, scratch_operands = 1 : i64, tpu.core_type = #tpu.core_type<tc>, window_params = [{pipeline_mode = #tpu.pipeline_mode<synchronous>, transform_indices = @transform_0, window_bounds = array<i64: 8, 2, 7>}, {pipeline_mode = #tpu.pipeline_mode<synchronous>, transform_indices = @transform_1, window_bounds = array<i64: 7, 256>}, {pipeline_mode = #tpu.pipeline_mode<synchronous>, transform_indices = @transform_2, window_bounds = array<i64: 64, 256>}, {pipeline_mode = #tpu.pipeline_mode<synchronous>, transform_indices = @transform_3, window_bounds = array<i64: 1, 256>}, {pipeline_mode = #tpu.pipeline_mode<synchronous>, transform_indices = @transform_4, window_bounds = array<i64: 64, 64>}, {pipeline_mode = #tpu.pipeline_mode<synchronous>, transform_indices = @transform_5, window_bounds = array<i64: 1, 64>}, {pipeline_mode = #tpu.pipeline_mode<synchronous>, transform_indices = @transform_6, window_bounds = array<i64: 2, 1>}, {pipeline_mode = #tpu.pipeline_mode<synchronous>, transform_indices = @transform_7, window_bounds = array<i64: 2, 128>}]} {
    %c0 = arith.constant 0 : index
    %c0_0 = arith.constant 0 : index
    %c0_1 = arith.constant 0 : index
    %0 = vector.load %arg1[%c0, %c0_0, %c0_1] : memref<8x2x7xf32, #tpu.memory_space<vmem>>, vector<8x2x7xf32>
    %1 = vector.shape_cast %0 : vector<8x2x7xf32> to vector<16x7xf32>
    %c0_2 = arith.constant 0 : index
    %c0_3 = arith.constant 0 : index
    %2 = vector.load %arg2[%c0_2, %c0_3] : memref<7x256xf32, #tpu.memory_space<vmem>>, vector<7x256xf32>
    %cst = arith.constant dense<0.000000e+00> : vector<16x256xf32>
    %3 = tpu.matmul %1, %2, %cst {dimension_numbers = #tpu.dot_dimension_numbers<[1], [0], [0], [1], [0, 0, 1, 1], [], []>} : vector<16x7xf32>, vector<7x256xf32>, vector<16x256xf32> -> vector<16x256xf32>
    %c0_4 = arith.constant 0 : index
    %c0_5 = arith.constant 0 : index
    %4 = vector.load %arg4[%c0_4, %c0_5] : memref<1x256xf32, #tpu.memory_space<vmem>>, vector<1x256xf32>
    %5 = vector.broadcast %4 : vector<1x256xf32> to vector<16x256xf32>
    %6 = arith.addf %3, %5 : vector<16x256xf32>
    %7 = vector.shape_cast %6 : vector<16x256xf32> to vector<8x2x256xf32>
    %c0_6 = arith.constant 0 : index
    %c0_7 = arith.constant 0 : index
    %8 = vector.load %arg3[%c0_6, %c0_7] : memref<64x256xf32, #tpu.memory_space<vmem>>, vector<64x256xf32>
    %cst_8 = arith.constant 0.000000e+00 : f32
    %9 = vector.broadcast %cst_8 : f32 to vector<2x64xf32>
    %cst_9 = arith.constant 0.000000e+00 : f32
    %10 = vector.broadcast %cst_9 : f32 to vector<2x64xf32>
    %11 = vector.extract_strided_slice %7 {offsets = [0, 0, 0], sizes = [1, 2, 256], strides = [1, 1, 1]} : vector<8x2x256xf32> to vector<1x2x256xf32>
    %12 = vector.shape_cast %11 : vector<1x2x256xf32> to vector<2x256xf32>
    %cst_10 = arith.constant dense<0.000000e+00> : vector<2x256xf32>
    %13 = tpu.matmul %9, %8, %cst_10 {dimension_numbers = #tpu.dot_dimension_numbers<[1], [0], [0], [1], [0, 0, 1, 1], [], []>} : vector<2x64xf32>, vector<64x256xf32>, vector<2x256xf32> -> vector<2x256xf32>
    %14 = arith.addf %12, %13 : vector<2x256xf32>
    %15 = vector.extract_strided_slice %14 {offsets = [0, 0], sizes = [2, 64], strides = [1, 1]} : vector<2x256xf32> to vector<2x64xf32>
    %16 = arith.negf %15 : vector<2x64xf32>
    %17 = math.exp %16 : vector<2x64xf32>
    %cst_11 = arith.constant 1.000000e+00 : f32
    %18 = vector.broadcast %cst_11 : f32 to vector<2x64xf32>
    %19 = arith.addf %18, %17 : vector<2x64xf32>
    %20 = arith.divf %18, %19 : vector<2x64xf32>
    %21 = vector.extract_strided_slice %14 {offsets = [0, 64], sizes = [2, 64], strides = [1, 1]} : vector<2x256xf32> to vector<2x64xf32>
    %22 = arith.negf %21 : vector<2x64xf32>
    %23 = math.exp %22 : vector<2x64xf32>
    %cst_12 = arith.constant 1.000000e+00 : f32
    %24 = vector.broadcast %cst_12 : f32 to vector<2x64xf32>
    %25 = arith.addf %24, %23 : vector<2x64xf32>
    %26 = arith.divf %24, %25 : vector<2x64xf32>
    %27 = vector.extract_strided_slice %14 {offsets = [0, 128], sizes = [2, 64], strides = [1, 1]} : vector<2x256xf32> to vector<2x64xf32>
    %28 = math.tanh %27 : vector<2x64xf32>
    %29 = vector.extract_strided_slice %14 {offsets = [0, 192], sizes = [2, 64], strides = [1, 1]} : vector<2x256xf32> to vector<2x64xf32>
    %30 = arith.negf %29 : vector<2x64xf32>
    %31 = math.exp %30 : vector<2x64xf32>
    %cst_13 = arith.constant 1.000000e+00 : f32
    %32 = vector.broadcast %cst_13 : f32 to vector<2x64xf32>
    %33 = arith.addf %32, %31 : vector<2x64xf32>
    %34 = arith.divf %32, %33 : vector<2x64xf32>
    %35 = arith.mulf %26, %10 : vector<2x64xf32>
    %36 = arith.mulf %20, %28 : vector<2x64xf32>
    %37 = arith.addf %35, %36 : vector<2x64xf32>
    %38 = math.tanh %37 : vector<2x64xf32>
    %39 = arith.mulf %34, %38 : vector<2x64xf32>
    %c0_14 = arith.constant 0 : index
    %c0_15 = arith.constant 0 : index
    %c0_16 = arith.constant 0 : index
    %40 = vector.load %arg9[%c0_14, %c0_15, %c0_16] : memref<8x2x64xf32, #tpu.memory_space<vmem>>, vector<1x2x64xf32>
    %41 = vector.shape_cast %40 : vector<1x2x64xf32> to vector<2x64xf32>
    %42 = vector.shape_cast %39 : vector<2x64xf32> to vector<1x2x64xf32>
    tpu.vector_store %arg9[%c0_14, %c0_15, %c0_16], %42 {strides = array<i32>} : memref<8x2x64xf32, #tpu.memory_space<vmem>>, vector<1x2x64xf32>,
    %43 = vector.extract_strided_slice %7 {offsets = [1, 0, 0], sizes = [1, 2, 256], strides = [1, 1, 1]} : vector<8x2x256xf32> to vector<1x2x256xf32>
    %44 = vector.shape_cast %43 : vector<1x2x256xf32> to vector<2x256xf32>
    %cst_17 = arith.constant dense<0.000000e+00> : vector<2x256xf32>
    %45 = tpu.matmul %39, %8, %cst_17 {dimension_numbers = #tpu.dot_dimension_numbers<[1], [0], [0], [1], [0, 0, 1, 1], [], []>} : vector<2x64xf32>, vector<64x256xf32>, vector<2x256xf32> -> vector<2x256xf32>
    %46 = arith.addf %44, %45 : vector<2x256xf32>
    %47 = vector.extract_strided_slice %46 {offsets = [0, 0], sizes = [2, 64], strides = [1, 1]} : vector<2x256xf32> to vector<2x64xf32>
    %48 = arith.negf %47 : vector<2x64xf32>
    %49 = math.exp %48 : vector<2x64xf32>
    %cst_18 = arith.constant 1.000000e+00 : f32
    %50 = vector.broadcast %cst_18 : f32 to vector<2x64xf32>
    %51 = arith.addf %50, %49 : vector<2x64xf32>
    %52 = arith.divf %50, %51 : vector<2x64xf32>
    %53 = vector.extract_strided_slice %46 {offsets = [0, 64], sizes = [2, 64], strides = [1, 1]} : vector<2x256xf32> to vector<2x64xf32>
    %54 = arith.negf %53 : vector<2x64xf32>
    %55 = math.exp %54 : vector<2x64xf32>
    %cst_19 = arith.constant 1.000000e+00 : f32
    %56 = vector.broadcast %cst_19 : f32 to vector<2x64xf32>
    %57 = arith.addf %56, %55 : vector<2x64xf32>
    %58 = arith.divf %56, %57 : vector<2x64xf32>
    %59 = vector.extract_strided_slice %46 {offsets = [0, 128], sizes = [2, 64], strides = [1, 1]} : vector<2x256xf32> to vector<2x64xf32>
    %60 = math.tanh %59 : vector<2x64xf32>
    %61 = vector.extract_strided_slice %46 {offsets = [0, 192], sizes = [2, 64], strides = [1, 1]} : vector<2x256xf32> to vector<2x64xf32>
    %62 = arith.negf %61 : vector<2x64xf32>
    %63 = math.exp %62 : vector<2x64xf32>
    %cst_20 = arith.constant 1.000000e+00 : f32
    %64 = vector.broadcast %cst_20 : f32 to vector<2x64xf32>
    %65 = arith.addf %64, %63 : vector<2x64xf32>
    %66 = arith.divf %64, %65 : vector<2x64xf32>
    %67 = arith.mulf %58, %37 : vector<2x64xf32>
    %68 = arith.mulf %52, %60 : vector<2x64xf32>
    %69 = arith.addf %67, %68 : vector<2x64xf32>
    %70 = math.tanh %69 : vector<2x64xf32>
    %71 = arith.mulf %66, %70 : vector<2x64xf32>
    %c1 = arith.constant 1 : index
    %c0_21 = arith.constant 0 : index
    %c0_22 = arith.constant 0 : index
    %72 = vector.load %arg9[%c1, %c0_21, %c0_22] : memref<8x2x64xf32, #tpu.memory_space<vmem>>, vector<1x2x64xf32>
    %73 = vector.shape_cast %72 : vector<1x2x64xf32> to vector<2x64xf32>
    %74 = vector.shape_cast %71 : vector<2x64xf32> to vector<1x2x64xf32>
    tpu.vector_store %arg9[%c1, %c0_21, %c0_22], %74 {strides = array<i32>} : memref<8x2x64xf32, #tpu.memory_space<vmem>>, vector<1x2x64xf32>,
    %75 = vector.extract_strided_slice %7 {offsets = [2, 0, 0], sizes = [1, 2, 256], strides = [1, 1, 1]} : vector<8x2x256xf32> to vector<1x2x256xf32>
    %76 = vector.shape_cast %75 : vector<1x2x256xf32> to vector<2x256xf32>
    %cst_23 = arith.constant dense<0.000000e+00> : vector<2x256xf32>
    %77 = tpu.matmul %71, %8, %cst_23 {dimension_numbers = #tpu.dot_dimension_numbers<[1], [0], [0], [1], [0, 0, 1, 1], [], []>} : vector<2x64xf32>, vector<64x256xf32>, vector<2x256xf32> -> vector<2x256xf32>
    %78 = arith.addf %76, %77 : vector<2x256xf32>
    %79 = vector.extract_strided_slice %78 {offsets = [0, 0], sizes = [2, 64], strides = [1, 1]} : vector<2x256xf32> to vector<2x64xf32>
    %80 = arith.negf %79 : vector<2x64xf32>
    %81 = math.exp %80 : vector<2x64xf32>
    %cst_24 = arith.constant 1.000000e+00 : f32
    %82 = vector.broadcast %cst_24 : f32 to vector<2x64xf32>
    %83 = arith.addf %82, %81 : vector<2x64xf32>
    %84 = arith.divf %82, %83 : vector<2x64xf32>
    %85 = vector.extract_strided_slice %78 {offsets = [0, 64], sizes = [2, 64], strides = [1, 1]} : vector<2x256xf32> to vector<2x64xf32>
    %86 = arith.negf %85 : vector<2x64xf32>
    %87 = math.exp %86 : vector<2x64xf32>
    %cst_25 = arith.constant 1.000000e+00 : f32
    %88 = vector.broadcast %cst_25 : f32 to vector<2x64xf32>
    %89 = arith.addf %88, %87 : vector<2x64xf32>
    %90 = arith.divf %88, %89 : vector<2x64xf32>
    %91 = vector.extract_strided_slice %78 {offsets = [0, 128], sizes = [2, 64], strides = [1, 1]} : vector<2x256xf32> to vector<2x64xf32>
    %92 = math.tanh %91 : vector<2x64xf32>
    %93 = vector.extract_strided_slice %78 {offsets = [0, 192], sizes = [2, 64], strides = [1, 1]} : vector<2x256xf32> to vector<2x64xf32>
    %94 = arith.negf %93 : vector<2x64xf32>
    %95 = math.exp %94 : vector<2x64xf32>
    %cst_26 = arith.constant 1.000000e+00 : f32
    %96 = vector.broadcast %cst_26 : f32 to vector<2x64xf32>
    %97 = arith.addf %96, %95 : vector<2x64xf32>
    %98 = arith.divf %96, %97 : vector<2x64xf32>
    %99 = arith.mulf %90, %69 : vector<2x64xf32>
    %100 = arith.mulf %84, %92 : vector<2x64xf32>
    %101 = arith.addf %99, %100 : vector<2x64xf32>
    %102 = math.tanh %101 : vector<2x64xf32>
    %103 = arith.mulf %98, %102 : vector<2x64xf32>
    %c2 = arith.constant 2 : index
    %c0_27 = arith.constant 0 : index
    %c0_28 = arith.constant 0 : index
    %104 = vector.load %arg9[%c2, %c0_27, %c0_28] : memref<8x2x64xf32, #tpu.memory_space<vmem>>, vector<1x2x64xf32>
    %105 = vector.shape_cast %104 : vector<1x2x64xf32> to vector<2x64xf32>
    %106 = vector.shape_cast %103 : vector<2x64xf32> to vector<1x2x64xf32>
    tpu.vector_store %arg9[%c2, %c0_27, %c0_28], %106 {strides = array<i32>} : memref<8x2x64xf32, #tpu.memory_space<vmem>>, vector<1x2x64xf32>,
    %107 = vector.extract_strided_slice %7 {offsets = [3, 0, 0], sizes = [1, 2, 256], strides = [1, 1, 1]} : vector<8x2x256xf32> to vector<1x2x256xf32>
    %108 = vector.shape_cast %107 : vector<1x2x256xf32> to vector<2x256xf32>
    %cst_29 = arith.constant dense<0.000000e+00> : vector<2x256xf32>
    %109 = tpu.matmul %103, %8, %cst_29 {dimension_numbers = #tpu.dot_dimension_numbers<[1], [0], [0], [1], [0, 0, 1, 1], [], []>} : vector<2x64xf32>, vector<64x256xf32>, vector<2x256xf32> -> vector<2x256xf32>
    %110 = arith.addf %108, %109 : vector<2x256xf32>
    %111 = vector.extract_strided_slice %110 {offsets = [0, 0], sizes = [2, 64], strides = [1, 1]} : vector<2x256xf32> to vector<2x64xf32>
    %112 = arith.negf %111 : vector<2x64xf32>
    %113 = math.exp %112 : vector<2x64xf32>
    %cst_30 = arith.constant 1.000000e+00 : f32
    %114 = vector.broadcast %cst_30 : f32 to vector<2x64xf32>
    %115 = arith.addf %114, %113 : vector<2x64xf32>
    %116 = arith.divf %114, %115 : vector<2x64xf32>
    %117 = vector.extract_strided_slice %110 {offsets = [0, 64], sizes = [2, 64], strides = [1, 1]} : vector<2x256xf32> to vector<2x64xf32>
    %118 = arith.negf %117 : vector<2x64xf32>
    %119 = math.exp %118 : vector<2x64xf32>
    %cst_31 = arith.constant 1.000000e+00 : f32
    %120 = vector.broadcast %cst_31 : f32 to vector<2x64xf32>
    %121 = arith.addf %120, %119 : vector<2x64xf32>
    %122 = arith.divf %120, %121 : vector<2x64xf32>
    %123 = vector.extract_strided_slice %110 {offsets = [0, 128], sizes = [2, 64], strides = [1, 1]} : vector<2x256xf32> to vector<2x64xf32>
    %124 = math.tanh %123 : vector<2x64xf32>
    %125 = vector.extract_strided_slice %110 {offsets = [0, 192], sizes = [2, 64], strides = [1, 1]} : vector<2x256xf32> to vector<2x64xf32>
    %126 = arith.negf %125 : vector<2x64xf32>
    %127 = math.exp %126 : vector<2x64xf32>
    %cst_32 = arith.constant 1.000000e+00 : f32
    %128 = vector.broadcast %cst_32 : f32 to vector<2x64xf32>
    %129 = arith.addf %128, %127 : vector<2x64xf32>
    %130 = arith.divf %128, %129 : vector<2x64xf32>
    %131 = arith.mulf %122, %101 : vector<2x64xf32>
    %132 = arith.mulf %116, %124 : vector<2x64xf32>
    %133 = arith.addf %131, %132 : vector<2x64xf32>
    %134 = math.tanh %133 : vector<2x64xf32>
    %135 = arith.mulf %130, %134 : vector<2x64xf32>
    %c3 = arith.constant 3 : index
    %c0_33 = arith.constant 0 : index
    %c0_34 = arith.constant 0 : index
    %136 = vector.load %arg9[%c3, %c0_33, %c0_34] : memref<8x2x64xf32, #tpu.memory_space<vmem>>, vector<1x2x64xf32>
    %137 = vector.shape_cast %136 : vector<1x2x64xf32> to vector<2x64xf32>
    %138 = vector.shape_cast %135 : vector<2x64xf32> to vector<1x2x64xf32>
    tpu.vector_store %arg9[%c3, %c0_33, %c0_34], %138 {strides = array<i32>} : memref<8x2x64xf32, #tpu.memory_space<vmem>>, vector<1x2x64xf32>,
    %139 = vector.extract_strided_slice %7 {offsets = [4, 0, 0], sizes = [1, 2, 256], strides = [1, 1, 1]} : vector<8x2x256xf32> to vector<1x2x256xf32>
    %140 = vector.shape_cast %139 : vector<1x2x256xf32> to vector<2x256xf32>
    %cst_35 = arith.constant dense<0.000000e+00> : vector<2x256xf32>
    %141 = tpu.matmul %135, %8, %cst_35 {dimension_numbers = #tpu.dot_dimension_numbers<[1], [0], [0], [1], [0, 0, 1, 1], [], []>} : vector<2x64xf32>, vector<64x256xf32>, vector<2x256xf32> -> vector<2x256xf32>
    %142 = arith.addf %140, %141 : vector<2x256xf32>
    %143 = vector.extract_strided_slice %142 {offsets = [0, 0], sizes = [2, 64], strides = [1, 1]} : vector<2x256xf32> to vector<2x64xf32>
    %144 = arith.negf %143 : vector<2x64xf32>
    %145 = math.exp %144 : vector<2x64xf32>
    %cst_36 = arith.constant 1.000000e+00 : f32
    %146 = vector.broadcast %cst_36 : f32 to vector<2x64xf32>
    %147 = arith.addf %146, %145 : vector<2x64xf32>
    %148 = arith.divf %146, %147 : vector<2x64xf32>
    %149 = vector.extract_strided_slice %142 {offsets = [0, 64], sizes = [2, 64], strides = [1, 1]} : vector<2x256xf32> to vector<2x64xf32>
    %150 = arith.negf %149 : vector<2x64xf32>
    %151 = math.exp %150 : vector<2x64xf32>
    %cst_37 = arith.constant 1.000000e+00 : f32
    %152 = vector.broadcast %cst_37 : f32 to vector<2x64xf32>
    %153 = arith.addf %152, %151 : vector<2x64xf32>
    %154 = arith.divf %152, %153 : vector<2x64xf32>
    %155 = vector.extract_strided_slice %142 {offsets = [0, 128], sizes = [2, 64], strides = [1, 1]} : vector<2x256xf32> to vector<2x64xf32>
    %156 = math.tanh %155 : vector<2x64xf32>
    %157 = vector.extract_strided_slice %142 {offsets = [0, 192], sizes = [2, 64], strides = [1, 1]} : vector<2x256xf32> to vector<2x64xf32>
    %158 = arith.negf %157 : vector<2x64xf32>
    %159 = math.exp %158 : vector<2x64xf32>
    %cst_38 = arith.constant 1.000000e+00 : f32
    %160 = vector.broadcast %cst_38 : f32 to vector<2x64xf32>
    %161 = arith.addf %160, %159 : vector<2x64xf32>
    %162 = arith.divf %160, %161 : vector<2x64xf32>
    %163 = arith.mulf %154, %133 : vector<2x64xf32>
    %164 = arith.mulf %148, %156 : vector<2x64xf32>
    %165 = arith.addf %163, %164 : vector<2x64xf32>
    %166 = math.tanh %165 : vector<2x64xf32>
    %167 = arith.mulf %162, %166 : vector<2x64xf32>
    %c4 = arith.constant 4 : index
    %c0_39 = arith.constant 0 : index
    %c0_40 = arith.constant 0 : index
    %168 = vector.load %arg9[%c4, %c0_39, %c0_40] : memref<8x2x64xf32, #tpu.memory_space<vmem>>, vector<1x2x64xf32>
    %169 = vector.shape_cast %168 : vector<1x2x64xf32> to vector<2x64xf32>
    %170 = vector.shape_cast %167 : vector<2x64xf32> to vector<1x2x64xf32>
    tpu.vector_store %arg9[%c4, %c0_39, %c0_40], %170 {strides = array<i32>} : memref<8x2x64xf32, #tpu.memory_space<vmem>>, vector<1x2x64xf32>,
    %171 = vector.extract_strided_slice %7 {offsets = [5, 0, 0], sizes = [1, 2, 256], strides = [1, 1, 1]} : vector<8x2x256xf32> to vector<1x2x256xf32>
    %172 = vector.shape_cast %171 : vector<1x2x256xf32> to vector<2x256xf32>
    %cst_41 = arith.constant dense<0.000000e+00> : vector<2x256xf32>
    %173 = tpu.matmul %167, %8, %cst_41 {dimension_numbers = #tpu.dot_dimension_numbers<[1], [0], [0], [1], [0, 0, 1, 1], [], []>} : vector<2x64xf32>, vector<64x256xf32>, vector<2x256xf32> -> vector<2x256xf32>
    %174 = arith.addf %172, %173 : vector<2x256xf32>
    %175 = vector.extract_strided_slice %174 {offsets = [0, 0], sizes = [2, 64], strides = [1, 1]} : vector<2x256xf32> to vector<2x64xf32>
    %176 = arith.negf %175 : vector<2x64xf32>
    %177 = math.exp %176 : vector<2x64xf32>
    %cst_42 = arith.constant 1.000000e+00 : f32
    %178 = vector.broadcast %cst_42 : f32 to vector<2x64xf32>
    %179 = arith.addf %178, %177 : vector<2x64xf32>
    %180 = arith.divf %178, %179 : vector<2x64xf32>
    %181 = vector.extract_strided_slice %174 {offsets = [0, 64], sizes = [2, 64], strides = [1, 1]} : vector<2x256xf32> to vector<2x64xf32>
    %182 = arith.negf %181 : vector<2x64xf32>
    %183 = math.exp %182 : vector<2x64xf32>
    %cst_43 = arith.constant 1.000000e+00 : f32
    %184 = vector.broadcast %cst_43 : f32 to vector<2x64xf32>
    %185 = arith.addf %184, %183 : vector<2x64xf32>
    %186 = arith.divf %184, %185 : vector<2x64xf32>
    %187 = vector.extract_strided_slice %174 {offsets = [0, 128], sizes = [2, 64], strides = [1, 1]} : vector<2x256xf32> to vector<2x64xf32>
    %188 = math.tanh %187 : vector<2x64xf32>
    %189 = vector.extract_strided_slice %174 {offsets = [0, 192], sizes = [2, 64], strides = [1, 1]} : vector<2x256xf32> to vector<2x64xf32>
    %190 = arith.negf %189 : vector<2x64xf32>
    %191 = math.exp %190 : vector<2x64xf32>
    %cst_44 = arith.constant 1.000000e+00 : f32
    %192 = vector.broadcast %cst_44 : f32 to vector<2x64xf32>
    %193 = arith.addf %192, %191 : vector<2x64xf32>
    %194 = arith.divf %192, %193 : vector<2x64xf32>
    %195 = arith.mulf %186, %165 : vector<2x64xf32>
    %196 = arith.mulf %180, %188 : vector<2x64xf32>
    %197 = arith.addf %195, %196 : vector<2x64xf32>
    %198 = math.tanh %197 : vector<2x64xf32>
    %199 = arith.mulf %194, %198 : vector<2x64xf32>
    %c5 = arith.constant 5 : index
    %c0_45 = arith.constant 0 : index
    %c0_46 = arith.constant 0 : index
    %200 = vector.load %arg9[%c5, %c0_45, %c0_46] : memref<8x2x64xf32, #tpu.memory_space<vmem>>, vector<1x2x64xf32>
    %201 = vector.shape_cast %200 : vector<1x2x64xf32> to vector<2x64xf32>
    %202 = vector.shape_cast %199 : vector<2x64xf32> to vector<1x2x64xf32>
    tpu.vector_store %arg9[%c5, %c0_45, %c0_46], %202 {strides = array<i32>} : memref<8x2x64xf32, #tpu.memory_space<vmem>>, vector<1x2x64xf32>,
    %203 = vector.extract_strided_slice %7 {offsets = [6, 0, 0], sizes = [1, 2, 256], strides = [1, 1, 1]} : vector<8x2x256xf32> to vector<1x2x256xf32>
    %204 = vector.shape_cast %203 : vector<1x2x256xf32> to vector<2x256xf32>
    %cst_47 = arith.constant dense<0.000000e+00> : vector<2x256xf32>
    %205 = tpu.matmul %199, %8, %cst_47 {dimension_numbers = #tpu.dot_dimension_numbers<[1], [0], [0], [1], [0, 0, 1, 1], [], []>} : vector<2x64xf32>, vector<64x256xf32>, vector<2x256xf32> -> vector<2x256xf32>
    %206 = arith.addf %204, %205 : vector<2x256xf32>
    %207 = vector.extract_strided_slice %206 {offsets = [0, 0], sizes = [2, 64], strides = [1, 1]} : vector<2x256xf32> to vector<2x64xf32>
    %208 = arith.negf %207 : vector<2x64xf32>
    %209 = math.exp %208 : vector<2x64xf32>
    %cst_48 = arith.constant 1.000000e+00 : f32
    %210 = vector.broadcast %cst_48 : f32 to vector<2x64xf32>
    %211 = arith.addf %210, %209 : vector<2x64xf32>
    %212 = arith.divf %210, %211 : vector<2x64xf32>
    %213 = vector.extract_strided_slice %206 {offsets = [0, 64], sizes = [2, 64], strides = [1, 1]} : vector<2x256xf32> to vector<2x64xf32>
    %214 = arith.negf %213 : vector<2x64xf32>
    %215 = math.exp %214 : vector<2x64xf32>
    %cst_49 = arith.constant 1.000000e+00 : f32
    %216 = vector.broadcast %cst_49 : f32 to vector<2x64xf32>
    %217 = arith.addf %216, %215 : vector<2x64xf32>
    %218 = arith.divf %216, %217 : vector<2x64xf32>
    %219 = vector.extract_strided_slice %206 {offsets = [0, 128], sizes = [2, 64], strides = [1, 1]} : vector<2x256xf32> to vector<2x64xf32>
    %220 = math.tanh %219 : vector<2x64xf32>
    %221 = vector.extract_strided_slice %206 {offsets = [0, 192], sizes = [2, 64], strides = [1, 1]} : vector<2x256xf32> to vector<2x64xf32>
    %222 = arith.negf %221 : vector<2x64xf32>
    %223 = math.exp %222 : vector<2x64xf32>
    %cst_50 = arith.constant 1.000000e+00 : f32
    %224 = vector.broadcast %cst_50 : f32 to vector<2x64xf32>
    %225 = arith.addf %224, %223 : vector<2x64xf32>
    %226 = arith.divf %224, %225 : vector<2x64xf32>
    %227 = arith.mulf %218, %197 : vector<2x64xf32>
    %228 = arith.mulf %212, %220 : vector<2x64xf32>
    %229 = arith.addf %227, %228 : vector<2x64xf32>
    %230 = math.tanh %229 : vector<2x64xf32>
    %231 = arith.mulf %226, %230 : vector<2x64xf32>
    %c6 = arith.constant 6 : index
    %c0_51 = arith.constant 0 : index
    %c0_52 = arith.constant 0 : index
    %232 = vector.load %arg9[%c6, %c0_51, %c0_52] : memref<8x2x64xf32, #tpu.memory_space<vmem>>, vector<1x2x64xf32>
    %233 = vector.shape_cast %232 : vector<1x2x64xf32> to vector<2x64xf32>
    %234 = vector.shape_cast %231 : vector<2x64xf32> to vector<1x2x64xf32>
    tpu.vector_store %arg9[%c6, %c0_51, %c0_52], %234 {strides = array<i32>} : memref<8x2x64xf32, #tpu.memory_space<vmem>>, vector<1x2x64xf32>,
    %235 = vector.extract_strided_slice %7 {offsets = [7, 0, 0], sizes = [1, 2, 256], strides = [1, 1, 1]} : vector<8x2x256xf32> to vector<1x2x256xf32>
    %236 = vector.shape_cast %235 : vector<1x2x256xf32> to vector<2x256xf32>
    %cst_53 = arith.constant dense<0.000000e+00> : vector<2x256xf32>
    %237 = tpu.matmul %231, %8, %cst_53 {dimension_numbers = #tpu.dot_dimension_numbers<[1], [0], [0], [1], [0, 0, 1, 1], [], []>} : vector<2x64xf32>, vector<64x256xf32>, vector<2x256xf32> -> vector<2x256xf32>
    %238 = arith.addf %236, %237 : vector<2x256xf32>
    %239 = vector.extract_strided_slice %238 {offsets = [0, 0], sizes = [2, 64], strides = [1, 1]} : vector<2x256xf32> to vector<2x64xf32>
    %240 = arith.negf %239 : vector<2x64xf32>
    %241 = math.exp %240 : vector<2x64xf32>
    %cst_54 = arith.constant 1.000000e+00 : f32
    %242 = vector.broadcast %cst_54 : f32 to vector<2x64xf32>
    %243 = arith.addf %242, %241 : vector<2x64xf32>
    %244 = arith.divf %242, %243 : vector<2x64xf32>
    %245 = vector.extract_strided_slice %238 {offsets = [0, 64], sizes = [2, 64], strides = [1, 1]} : vector<2x256xf32> to vector<2x64xf32>
    %246 = arith.negf %245 : vector<2x64xf32>
    %247 = math.exp %246 : vector<2x64xf32>
    %cst_55 = arith.constant 1.000000e+00 : f32
    %248 = vector.broadcast %cst_55 : f32 to vector<2x64xf32>
    %249 = arith.addf %248, %247 : vector<2x64xf32>
    %250 = arith.divf %248, %249 : vector<2x64xf32>
    %251 = vector.extract_strided_slice %238 {offsets = [0, 128], sizes = [2, 64], strides = [1, 1]} : vector<2x256xf32> to vector<2x64xf32>
    %252 = math.tanh %251 : vector<2x64xf32>
    %253 = vector.extract_strided_slice %238 {offsets = [0, 192], sizes = [2, 64], strides = [1, 1]} : vector<2x256xf32> to vector<2x64xf32>
    %254 = arith.negf %253 : vector<2x64xf32>
    %255 = math.exp %254 : vector<2x64xf32>
    %cst_56 = arith.constant 1.000000e+00 : f32
    %256 = vector.broadcast %cst_56 : f32 to vector<2x64xf32>
    %257 = arith.addf %256, %255 : vector<2x64xf32>
    %258 = arith.divf %256, %257 : vector<2x64xf32>
    %259 = arith.mulf %250, %229 : vector<2x64xf32>
    %260 = arith.mulf %244, %252 : vector<2x64xf32>
    %261 = arith.addf %259, %260 : vector<2x64xf32>
    %262 = math.tanh %261 : vector<2x64xf32>
    %263 = arith.mulf %258, %262 : vector<2x64xf32>
    %c7 = arith.constant 7 : index
    %c0_57 = arith.constant 0 : index
    %c0_58 = arith.constant 0 : index
    %264 = vector.load %arg9[%c7, %c0_57, %c0_58] : memref<8x2x64xf32, #tpu.memory_space<vmem>>, vector<1x2x64xf32>
    %265 = vector.shape_cast %264 : vector<1x2x64xf32> to vector<2x64xf32>
    %266 = vector.shape_cast %263 : vector<2x64xf32> to vector<1x2x64xf32>
    tpu.vector_store %arg9[%c7, %c0_57, %c0_58], %266 {strides = array<i32>} : memref<8x2x64xf32, #tpu.memory_space<vmem>>, vector<1x2x64xf32>,
    %c0_59 = arith.constant 0 : index
    %c0_60 = arith.constant 0 : index
    %c0_61 = arith.constant 0 : index
    %267 = vector.load %arg9[%c0_59, %c0_60, %c0_61] : memref<8x2x64xf32, #tpu.memory_space<vmem>>, vector<8x2x64xf32>
    %cst_62 = arith.constant 0.000000e+00 : f32
    %268 = vector.broadcast %cst_62 : f32 to vector<8x2x64xf32>
    %269 = arith.maximumf %267, %268 : vector<8x2x64xf32>
    %270 = vector.shape_cast %269 : vector<8x2x64xf32> to vector<16x64xf32>
    %c0_63 = arith.constant 0 : index
    %c0_64 = arith.constant 0 : index
    %271 = vector.load %arg5[%c0_63, %c0_64] : memref<64x64xf32, #tpu.memory_space<vmem>>, vector<64x64xf32>
    %cst_65 = arith.constant dense<0.000000e+00> : vector<16x64xf32>
    %272 = tpu.matmul %270, %271, %cst_65 {dimension_numbers = #tpu.dot_dimension_numbers<[1], [0], [0], [1], [0, 0, 1, 1], [], []>} : vector<16x64xf32>, vector<64x64xf32>, vector<16x64xf32> -> vector<16x64xf32>
    %c0_66 = arith.constant 0 : index
    %c0_67 = arith.constant 0 : index
    %273 = vector.load %arg6[%c0_66, %c0_67] : memref<1x64xf32, #tpu.memory_space<vmem>>, vector<1x64xf32>
    %274 = vector.broadcast %273 : vector<1x64xf32> to vector<16x64xf32>
    %275 = arith.addf %272, %274 : vector<16x64xf32>
    %276 = vector.shape_cast %275 : vector<16x64xf32> to vector<8x2x64xf32>
    %cst_68 = arith.constant dense<0.000000e+00> : vector<2x64xf32>
    %277 = vector.multi_reduction <add>, %276, %cst_68 [0] : vector<8x2x64xf32> to vector<2x64xf32>
    %cst_69 = arith.constant 1.250000e-01 : f32
    %278 = vector.broadcast %cst_69 : f32 to vector<2x64xf32>
    %279 = arith.mulf %277, %278 : vector<2x64xf32>
    %280 = tpu.iota {dimensions = array<i32: 0>} : vector<8x2x1xi32>
    %c0_70 = arith.constant 0 : index
    %c0_71 = arith.constant 0 : index
    %281 = vector.load %arg7[%c0_70, %c0_71] : memref<2x1xi32, #tpu.memory_space<vmem>>, vector<2x1xi32>
    %282 = vector.shape_cast %281 : vector<2x1xi32> to vector<1x2x1xi32>
    %283 = vector.broadcast %282 : vector<1x2x1xi32> to vector<8x2x1xi32>
    %284 = arith.cmpi sge, %280, %283 : vector<8x2x1xi32>
    %c2_i32 = arith.constant 2 : i32
    %285 = vector.broadcast %c2_i32 : i32 to vector<2x1xi32>
    %286 = arith.addi %281, %285 : vector<2x1xi32>
    %287 = vector.shape_cast %286 : vector<2x1xi32> to vector<1x2x1xi32>
    %288 = vector.broadcast %287 : vector<1x2x1xi32> to vector<8x2x1xi32>
    %289 = arith.cmpi slt, %280, %288 : vector<8x2x1xi32>
    %290 = arith.andi %284, %289 : vector<8x2x1xi1>
    %cst_72 = arith.constant 0.000000e+00 : f32
    %291 = vector.shape_cast %290 : vector<8x2x1xi1> to vector<8x2x1xi1>
    %292 = vector.broadcast %291 : vector<8x2x1xi1> to vector<8x2x64xi1>
    %293 = vector.broadcast %cst_72 : f32 to vector<8x2x64xf32>
    %294 = arith.select %292, %276, %293 : vector<8x2x64xi1>, vector<8x2x64xf32>
    %cst_73 = arith.constant dense<0.000000e+00> : vector<2x64xf32>
    %295 = vector.multi_reduction <add>, %294, %cst_73 [0] : vector<8x2x64xf32> to vector<2x64xf32>
    %cst_74 = arith.constant 5.000000e-01 : f32
    %296 = vector.broadcast %cst_74 : f32 to vector<2x64xf32>
    %297 = arith.mulf %295, %296 : vector<2x64xf32>
    %298 = vector.extract_strided_slice %279 {offsets = [0, 0], sizes = [2, 32], strides = [1, 1]} : vector<2x64xf32> to vector<2x32xf32>
    %299 = vector.extract_strided_slice %297 {offsets = [0, 0], sizes = [2, 32], strides = [1, 1]} : vector<2x64xf32> to vector<2x32xf32>
    %300 = vector.extract_strided_slice %279 {offsets = [0, 32], sizes = [2, 32], strides = [1, 1]} : vector<2x64xf32> to vector<2x32xf32>
    %301 = vector.extract_strided_slice %297 {offsets = [0, 32], sizes = [2, 32], strides = [1, 1]} : vector<2x64xf32> to vector<2x32xf32>
    %302 = tpu.concatenate %298, %299, %300, %301 in 1 : vector<2x32xf32>, vector<2x32xf32>, vector<2x32xf32>, vector<2x32xf32> -> vector<2x128xf32>
    %c0_75 = arith.constant 0 : index
    %c0_76 = arith.constant 0 : index
    %303 = vector.load %arg8[%c0_75, %c0_76] : memref<2x128xf32, #tpu.memory_space<vmem>>, vector<2x128xf32>
    tpu.vector_store %arg8[%c0_75, %c0_76], %302 {strides = array<i32>} : memref<2x128xf32, #tpu.memory_space<vmem>>, vector<2x128xf32>,
    return
  }
  func.func @transform_0(%arg0: i32) -> (i32, i32, i32) {
    %c0_i32 = arith.constant 0 : i32
    %c0_i32_0 = arith.constant 0 : i32
    %c0_i32_1 = arith.constant 0 : i32
    %c0_i32_2 = arith.constant 0 : i32
    return %c0_i32, %c0_i32_0, %c0_i32_1 : i32, i32, i32
  }
  func.func @transform_1(%arg0: i32) -> (i32, i32) {
    %c0_i32 = arith.constant 0 : i32
    %c0_i32_0 = arith.constant 0 : i32
    %c0_i32_1 = arith.constant 0 : i32
    return %c0_i32, %c0_i32_0 : i32, i32
  }
  func.func @transform_2(%arg0: i32) -> (i32, i32) {
    %c0_i32 = arith.constant 0 : i32
    %c0_i32_0 = arith.constant 0 : i32
    %c0_i32_1 = arith.constant 0 : i32
    return %c0_i32, %c0_i32_0 : i32, i32
  }
  func.func @transform_3(%arg0: i32) -> (i32, i32) {
    %c0_i32 = arith.constant 0 : i32
    %c0_i32_0 = arith.constant 0 : i32
    %c0_i32_1 = arith.constant 0 : i32
    return %c0_i32, %c0_i32_0 : i32, i32
  }
  func.func @transform_4(%arg0: i32) -> (i32, i32) {
    %c0_i32 = arith.constant 0 : i32
    %c0_i32_0 = arith.constant 0 : i32
    %c0_i32_1 = arith.constant 0 : i32
    return %c0_i32, %c0_i32_0 : i32, i32
  }
  func.func @transform_5(%arg0: i32) -> (i32, i32) {
    %c0_i32 = arith.constant 0 : i32
    %c0_i32_0 = arith.constant 0 : i32
    %c0_i32_1 = arith.constant 0 : i32
    return %c0_i32, %c0_i32_0 : i32, i32
  }
  func.func @transform_6(%arg0: i32) -> (i32, i32) {
    %c0_i32 = arith.constant 0 : i32
    %c0_i32_0 = arith.constant 0 : i32
    %c0_i32_1 = arith.constant 0 : i32
    return %c0_i32, %c0_i32_0 : i32, i32
  }
  func.func @transform_7(%arg0: i32) -> (i32, i32) {
    %c0_i32 = arith.constant 0 : i32
    %c0_i32_0 = arith.constant 0 : i32
    %c0_i32_1 = arith.constant 0 : i32
    return %c0_i32, %c0_i32_0 : i32, i32
  }
}

</mosaic_0001>

<bundles_post_ra>
// kernel: tpu_custom_call.1
= control target key start
LH: loop header
LB: loop body
LE: loop exit
PB: predicated region body
PF: predicated region fallthrough
CT: control target
= control target key end

     0   :  { %12 = vsyncpa [#allocation4], 0  ;;  %s1998_s0 = inlined_call_operand.vmem [shape: f32[8,2,7], index: 0, kind: input, shape index: {}]   ;;  %s1999_s1 = inlined_call_operand.vmem [shape: f32[7,256], index: 1, kind: input, shape index: {}]   ;;  %s2000_s2 = inlined_call_operand.hbm [shape: f32[64,256], index: 2, kind: input, shape index: {}]   ;;  %s2001_s3 = inlined_call_operand.vmem [shape: f32[1,256], index: 3, kind: input, shape index: {}]   ;;  %s2002_s4 = inlined_call_operand.hbm [shape: f32[64,64], index: 4, kind: input, shape index: {}]   ;;  %s2003_s5 = inlined_call_operand.vmem [shape: f32[1,64], index: 5, kind: input, shape index: {}]   ;;  %s2004_s6 = inlined_call_operand.vmem [shape: s32[2,1], index: 6, kind: input, shape index: {}]   ;;  %s2005_s7 = inlined_call_operand.hbm [shape: f32[2,128], index: 7, kind: output, shape index: {}]  }
   0x1   :  { %13 = vsyncpa [#allocation7], 0 }
   0x2   :  { %14 = vsyncpa [#allocation5], 0  ;;  %s23_s26 = sshll.u32 %s2000_s2, 4  ;;  %s1549_s27 = smov [#allocation3]   ;;  %s24_s26 = int_to_ptr.hbm [resolvable:$true] %s23_s26 }
   0x3   :  { %s25_s28 = sshll.u32 %s1549_s27, 4  ;;  %s38_s8 = sshll.u32 %s2002_s4, 4  ;;  %s26_s28 = int_to_ptr.vmem [resolvable:$true] %s25_s28  ;;  %s39_s8 = int_to_ptr.hbm [resolvable:$true] %s38_s8 }
   0x4   :  { %s1550_s9 = smov 256   ;;  %s1551_s10 = smov 16  }
   0x5   :  { %31 = dma.hbm_to_vmem [thread:$0]  %s24_s26, 2048, %s26_s28, [#allocation4], %s1550_s9, %s1550_s9, %s1551_s10  }
   0x6   :  { %s1552_s11 = smov [#allocation6]   ;;  %s1553_s13 = smov 128  }
   0x7   :  { %s40_s12 = sshll.u32 %s1552_s11, 4  ;;  %s1554_s14 = smov 8   ;;  %s41_s12 = int_to_ptr.vmem [resolvable:$true] %s40_s12 }
   0x8   :  { %46 = dma.hbm_to_vmem [thread:$0]  %s39_s8, 1024, %s41_s12, [#allocation7], %s1553_s13, %s1553_s13, %s1554_s14  }
   0x9   :  { %1543 = dma.done.wait [#allocation4], 2048  }
   0xa   :  { %1544 = vsyncadd [#allocation4], 4294965248 }
   0xb   :  { %1545 = dma.done.wait [#allocation7], 1024  }
   0xc   :  { %1546 = vsyncadd [#allocation7], 4294966272  ;;  %v1606_v0 = vld [vmem:[#allocation3 + $0x70] sm:$0xff]  ;;  %v1608_v1 = vld [vmem:[#allocation3 + $0x60] sm:$0xff]  ;;  %vm105_vm0 = vcmask 1046528   ;;  %vm100_vm1 = vcmask 56320  }
   0xd   :  { %218 = vmatpush.msra.mxu3 %v1606_v0  ;;  %438 = vmatpush.msra.mxu2 %v1606_v0  ;;  %v1612_v2 = vld [vmem:[#allocation3 + $0x50] sm:$0xff]  ;;  %v1616_v3 = vld [vmem:[#allocation3 + $0x40] sm:$0xff]  ;;  %v1621_v5 = vld [vmem:[#allocation3 + $0x78] sm:$0xff]  ;;  %v1555_v19 = vmov 0.0   ;;  %vm166_vm2 = vcmask 1043458   ;;  %vm169_vm3 = vcmask 1045508  }
   0xe   :  { %v1618_v4 = vld [vmem:[#allocation3 + $0x30] sm:$0xff]  ;;  %v59_v7 = vld [vmem:[%s1998_s0] sm:$0x3]  ;;  %v60_v8 = vld [vmem:[%s1998_s0 + $0x2] sm:$0x3]  ;;  %vm172_vm4 = vcmask 1045504  }
   0xf   :  { %219 = vmatpush.msra.mxu3 %v1608_v1  ;;  %439 = vmatpush.msra.mxu2 %v1608_v1  ;;  %v68_v6 = vld [vmem:[%s1999_s1 + $0x8] sm:$0x7f]  ;;  %v61_v9 = vld [vmem:[%s1998_s0 + $0x4] sm:$0x3]  ;;  %v62_v10 = vld [vmem:[%s1998_s0 + $0x6] sm:$0x3] }
  0x10   :  { %1325 = vmatpush.msk.msra.mxu1 %vm105_vm0, %v68_v6  ;;  %83 = vst [vmem:[#allocation1] ss:$4 sm:$0xff] %v59_v7  ;;  %v67_v11 = vld [vmem:[%s1999_s1] sm:$0x7f]  ;;  %v1645_v12 = vld [vmem:[#allocation3 + $0x20] sm:$0xff]  ;;  %v1653_v14 = vld [vmem:[#allocation3 + $0x10] sm:$0xff] }
  0x11   :  { %220 = vmatpush.msra.mxu3 %v1612_v2  ;;  %440 = vmatpush.msra.mxu2 %v1612_v2  ;;  %85 = vst [vmem:[#allocation1 + $0x1] ss:$4 sm:$0xff] %v60_v8  ;;  %v1650_v13 = vld [vmem:[#allocation3 + $0x68] sm:$0xff]  ;;  %v1658_v15 = vld [vmem:[#allocation3 + $0x58] sm:$0xff]  ;;  %v1661_v16 = vld [vmem:[#allocation3] sm:$0xff]  ;;  %vm164_vm5 = vcmask 1041408  }
  0x12   :  { %348 = vmatpush.msrb.mxu1 %v1621_v5  ;;  %1322 = vmatpush.msk.msra.mxu0 %vm105_vm0, %v67_v11  ;;  %87 = vst [vmem:[#allocation1 + $0x2] ss:$4 sm:$0xff] %v61_v9  ;;  %v1666_v17 = vld [vmem:[#allocation3 + $0x48] sm:$0xff]  ;;  %v1672_v18 = vld [vmem:[#allocation3 + $0x38] sm:$0xff]  ;;  %v63_v57 = vld [vmem:[%s1998_s0 + $0x8] sm:$0x3] }
  0x13   :  { %221 = vmatpush.msra.mxu3 %v1616_v3  ;;  %441 = vmatpush.msra.mxu2 %v1616_v3  ;;  %89 = vst [vmem:[#allocation1 + $0x3] ss:$4 sm:$0xff] %v62_v10  ;;  %v1679_v21 = vld [vmem:[#allocation3 + $0x28] sm:$0xff]  ;;  %v1685_v22 = vld [vmem:[#allocation3 + $0x18] sm:$0xff]  ;;  %v64_v58 = vld [vmem:[%s1998_s0 + $0xa] sm:$0x3] }
  0x14   :  { %328 = vmatpush.msrb.mxu0 %v1606_v0  ;;  %349 = vmatpush.msrb.mxu1 %v1650_v13  ;;  %v1691_v23 = vld [vmem:[#allocation3 + $0x8] sm:$0xff]  ;;  %v65_v59 = vld [vmem:[%s1998_s0 + $0xc] sm:$0x3]  ;;  %v66_v60 = vld [vmem:[%s1998_s0 + $0xe] sm:$0x3]  ;;  %vm315_vm14 = vcmask 517120  }
  0x15   :  { %222 = vmatpush.msra.mxu3 %v1618_v4  ;;  %442 = vmatpush.msra.mxu2 %v1618_v4  ;;  %v1743_v24 = vld [vmem:[%s2001_s3] sm:$0x3]  ;;  %s1556_s3 = smov 64   ;;  %91 = vst [vmem:[#allocation1 + $0x20] ss:$4 sm:$0xff] %v63_v57  ;;  %vm206_vm15 = vcmask 523264  }
  0x16   :  { %329 = vmatpush.msrb.mxu0 %v1608_v1  ;;  %350 = vmatpush.msrb.mxu1 %v1658_v15  ;;  %v72_v25 = vperm.slane %v1743_v24, 1  ;;  %v71_v26 = vperm.slane %v1743_v24, 0  ;;  %93 = vst [vmem:[#allocation1 + $0x21] ss:$4 sm:$0xff] %v64_v58  ;;  %s1559_s13 = smov [#allocation8]   ;;  %s1311_s15 = sshll.u32 %s2005_s7, 4  ;;  %s1312_s15 = int_to_ptr.hbm [resolvable:$true] %s1311_s15 }
  0x17   :  { %223 = vmatpush.msra.mxu3 %v1645_v12  ;;  %443 = vmatpush.msra.mxu2 %v1645_v12  ;;  %95 = vst [vmem:[#allocation1 + $0x22] ss:$4 sm:$0xff] %v65_v59  ;;  %s1309_s14 = sshll.u32 %s1559_s13, 4  ;;  %s1310_s14 = int_to_ptr.vmem [resolvable:$true] %s1309_s14 }
  0x18   :  { %330 = vmatpush.msrb.mxu0 %v1612_v2  ;;  %351 = vmatpush.msrb.mxu1 %v1666_v17  ;;  %97 = vst [vmem:[#allocation1 + $0x23] ss:$4 sm:$0xff] %v66_v60 }
  0x19   :  { %224 = vmatpush.msra.mxu3 %v1653_v14  ;;  %444 = vmatpush.msra.mxu2 %v1653_v14 }
  0x1a   :  { %331 = vmatpush.msrb.mxu0 %v1616_v3  ;;  %352 = vmatpush.msrb.mxu1 %v1672_v18  ;;  %v98_v20 = vld.sshfl [vmem:[#allocation1] sm:$0xff pattern:$0x73625140] }
  0x1b   :  { %225 = vmatpush.msra.mxu3 %v1661_v16  ;;  %1326 = vmatmul.msk.f32.vlgmr.msra.gmra.mxu1 %vm100_vm1, %v98_v20 }
  0x1c   :  { %226 = vmatmul.f32.vlgmr.msra.gmra.mxu3 %v1555_v19  ;;  %332 = vmatpush.msrb.mxu0 %v1618_v4 }
  0x1d   :  { %238 = vmatpush.msrb.mxu3 %v1621_v5  ;;  %1323 = vmatmul.msk.f32.vlgmr.msra.gmra.mxu0 %vm100_vm1, %v98_v20 }
  0x1e   :  { %353 = vmatpush.msrb.mxu1 %v1679_v21  ;;  %333 = vmatpush.msrb.mxu0 %v1645_v12 }
  0x1f   :  { %239 = vmatpush.msrb.mxu3 %v1650_v13  ;;  %445 = vmatpush.msra.mxu2 %v1661_v16  ;;  %v99_v6 = vld.sshfl [vmem:[#allocation1 + $0x20] sm:$0xff pattern:$0x73625140] }
  0x20   :  { %354 = vmatpush.msrb.mxu1 %v1685_v22  ;;  %334 = vmatpush.msrb.mxu0 %v1653_v14 }
  0x21   :  { %240 = vmatpush.msrb.mxu3 %v1658_v15  ;;  %658 = vmatpush.msrb.mxu2 %v1606_v0 }
  0x22   :  { %355 = vmatpush.msrb.mxu1 %v1691_v23  ;;  %335 = vmatpush.msrb.mxu0 %v1661_v16 }
  0x23   :  { %241 = vmatpush.msrb.mxu3 %v1666_v17  ;;  %659 = vmatpush.msrb.mxu2 %v1608_v1 }
  0x24   :  { %548 = vmatpush.msra.mxu0 %v1606_v0  ;;  %568 = vmatpush.msra.mxu1 %v1621_v5 }
  0x25   :  { %242 = vmatpush.msrb.mxu3 %v1672_v18  ;;  %660 = vmatpush.msrb.mxu2 %v1612_v2 }
  0x26   :  { %549 = vmatpush.msra.mxu0 %v1608_v1  ;;  %569 = vmatpush.msra.mxu1 %v1650_v13 }
  0x27   :  { %243 = vmatpush.msrb.mxu3 %v1679_v21  ;;  %661 = vmatpush.msrb.mxu2 %v1616_v3 }
  0x28   :  { %550 = vmatpush.msra.mxu0 %v1612_v2  ;;  %570 = vmatpush.msra.mxu1 %v1658_v15 }
  0x29   :  { %244 = vmatpush.msrb.mxu3 %v1685_v22  ;;  %662 = vmatpush.msrb.mxu2 %v1618_v4 }
  0x2a   :  { %551 = vmatpush.msra.mxu0 %v1616_v3  ;;  %571 = vmatpush.msra.mxu1 %v1666_v17 }
  0x2b   :  { %245 = vmatpush.msrb.mxu3 %v1691_v23  ;;  %663 = vmatpush.msrb.mxu2 %v1645_v12 }
  0x2c   :  { %246 = vmatmul.f32.vlgmr.msrb.gmra.mxu3 %v1555_v19  ;;  %552 = vmatpush.msra.mxu0 %v1618_v4 }
  0x2d   :  { %458 = vmatpush.msra.mxu3 %v1621_v5  ;;  %572 = vmatpush.msra.mxu1 %v1672_v18 }
  0x2e   :  { %553 = vmatpush.msra.mxu0 %v1645_v12  ;;  %664 = vmatpush.msrb.mxu2 %v1653_v14 }
  0x2f   :  { %459 = vmatpush.msra.mxu3 %v1650_v13  ;;  %573 = vmatpush.msra.mxu1 %v1679_v21 }
  0x30   :  { %554 = vmatpush.msra.mxu0 %v1653_v14  ;;  %665 = vmatpush.msrb.mxu2 %v1661_v16 }
  0x31   :  { %460 = vmatpush.msra.mxu3 %v1658_v15  ;;  %574 = vmatpush.msra.mxu1 %v1685_v22 }
  0x32   :  { %555 = vmatpush.msra.mxu0 %v1661_v16  ;;  %1327 = vmatmul.msk.f32.gmra.mxu1 %vm100_vm1, %v99_v6 }
  0x33   :  { %461 = vmatpush.msra.mxu3 %v1666_v17  ;;  %575 = vmatpush.msra.mxu1 %v1691_v23 }
  0x34   :  { %1324 = vmatmul.msk.f32.gmra.mxu0 %vm100_vm1, %v99_v6 }
  0x35   :  { %462 = vmatpush.msra.mxu3 %v1672_v18 }
  0x37   :  { %463 = vmatpush.msra.mxu3 %v1679_v21 }
  0x39   :  { %464 = vmatpush.msra.mxu3 %v1685_v22 }
  0x3b   :  { %465 = vmatpush.msra.mxu3 %v1691_v23 }
  0x3d   :  { %678 = vmatpush.msrb.mxu3 %v1621_v5 }
  0x3f   :  { %679 = vmatpush.msrb.mxu3 %v1650_v13 }
  0x41   :  { %680 = vmatpush.msrb.mxu3 %v1658_v15 }
  0x43   :  { %681 = vmatpush.msrb.mxu3 %v1666_v17 }
  0x45   :  { %682 = vmatpush.msrb.mxu3 %v1672_v18 }
  0x47   :  { %683 = vmatpush.msrb.mxu3 %v1679_v21 }
  0x49   :  { %684 = vmatpush.msrb.mxu3 %v1685_v22 }
  0x4b   :  { %685 = vmatpush.msrb.mxu3 %v1691_v23 }
  0x98   :  { %v152_v27 = vpop.f32.mrf.mxu1 }
  0x99   :  { %v153_v28 = vadd.f32 %v152_v27, %v72_v25 }
  0x9a   :  { %v129_v29 = vpop.f32.mrf.mxu0 }
  0x9b   :  { %v130_v30 = vadd.f32 %v129_v29, %v71_v26  ;;  %v162_v31 = vrot.slane %v153_v28, 6 }
  0x9d   :  { %v1752_v32 = vsel %vm166_vm2, %v130_v30, %v162_v31  ;;  %v1755_v33 = vsel %vm169_vm3, %v130_v30, %v162_v31  ;;  %v1758_v34 = vsel %vm172_vm4, %v162_v31, %v130_v30  ;;  %v165_v37 = vsel %vm164_vm5, %v130_v30, %v162_v31 }
  0x9f   :  { %v227_v35 = vpop.f32.mrf.mxu3 }
  0xaf   :  { %v247_v36 = vpop.f32.mrf.mxu3 }
  0xb0   :  { %v252_v38 = vrot.slane %v247_v36, 6 }
  0xb2   :  { %v253_v39 = vsel %vm164_vm5, %v227_v35, %v252_v38 }
  0xb3   :  { %v255_v40 = vadd.f32 %v253_v39, %v165_v37 }
  0xb5   :  { %v1328_v41 = vmul.f32 -1.442695, %v255_v40  ;;  %v276_v45 = vrot.slane %v255_v40, 2 }
  0xb7   :  { %1375 = vpow2.f32 %v1328_v41 }
  0xbd   :  { %v1376_v42 = vpop.eup %1375 }
  0xbe   :  { %v259_v43 = vadd.f32 1.0, %v1376_v42 }
  0xc0   :  { %1377 = vrcp.f32 %v259_v43  ;;  %v271_v48 = vand.u32 2147483648, %v259_v43  ;;  %v269_v50 = vand.u32 2147483647, %v259_v43  ;;  %vm265_vm7 = vweird.f32 %v259_v43 }
  0xc1   :  { %1379 = vtanh.f32 %v276_v45  ;;  %v132_v45 = vpop.f32.mrf.mxu0 }
  0xc2   :  { %v272_v52 = vor.u32 1.1754944e-38, %v271_v48  ;;  %vm270_vm9 = vcmp.eq.f32.partialorder %v269_v50, 8.507059e+37 }
  0xc6   :  { %v1378_v44 = vpop.eup %1377 }
  0xc7   :  { %v261_v46 = vmul.f32 %v1378_v44, %v259_v43  ;;  %vm266_vm6 = vweird.f32 %v1378_v44  ;;  %v1380_v54 = vpop.eup %1379  ;;  %v155_v43 = vpop.f32.mrf.mxu1 }
  0xc8   :  { %vm267_vm8 = vmor %vm265_vm7, %vm266_vm6 }
  0xc9   :  { %v262_v47 = vsub.f32 1.0, %v261_v46  ;;  %v1805_v46 = vadd.f32 %v132_v45, %v71_v26 }
  0xcb   :  { %v263_v49 = vmul.f32 %v1378_v44, %v262_v47 }
  0xcd   :  { %v264_v51 = vadd.f32 %v1378_v44, %v263_v49 }
  0xcf   :  { %v268_v53 = vsel %vm267_vm8, %v1378_v44, %v264_v51  ;;  %v156_v44 = vadd.f32 %v155_v43, %v72_v25  ;;  %v168_v51 = vrot.slane %v1752_v32, 2 }
  0xd0   :  { %v273_v55 = vsel %vm270_vm9, %v272_v52, %v268_v53 }
  0xd1   :  { %v303_v56 = vmul.f32 %v1380_v54, %v273_v55  ;;  %v302_v61 = vmul.f32 0.0, %v273_v55  ;;  %v1807_v47 = vrot.slane %v156_v44, 6 }
  0xd3   :  { %305 = vrot.lane.b32.xlu0 %v303_v56, %s1556_s3  ;;  %v1812_v48 = vsel %vm166_vm2, %v1805_v46, %v1807_v47  ;;  %v1817_v49 = vsel %vm169_vm3, %v1805_v46, %v1807_v47  ;;  %v1822_v25 = vsel %vm172_vm4, %v1807_v47, %v1805_v46 }
  0xdb   :  { %279 = vrot.lane.b32.xlu0 %v255_v40, %s1556_s3 }
 0x145   :  { %v306_v62 = vpop.permute.xlu0 %305 }
 0x146   :  { %v1776_v63 = vadd.f32 %v306_v62, %v302_v61 }
 0x148   :  { %1381 = vtanh.f32 %v1776_v63 }
 0x14d   :  { %v280_v8 = vpop.permute.xlu0 %279 }
 0x14e   :  { %v1382_v7 = vpop.eup %1381  ;;  %v281_v9 = vrot.slane %v280_v8, 2 }
 0x14f   :  { %311 = vrot.lane.b32.xlu1 %v1382_v7, %s1556_s3 }
 0x150   :  { %v1329_v10 = vmul.f32 -1.442695, %v281_v9 }
 0x152   :  { %1383 = vpow2.f32 %v1329_v10 }
 0x158   :  { %v1384_v11 = vpop.eup %1383 }
 0x159   :  { %v286_v19 = vadd.f32 1.0, %v1384_v11 }
 0x15b   :  { %1385 = vrcp.f32 %v286_v19  ;;  %v298_v31 = vand.u32 2147483648, %v286_v19  ;;  %vm292_vm11 = vweird.f32 %v286_v19  ;;  %v296_v35 = vand.u32 2147483647, %v286_v19 }
 0x15d   :  { %v299_v37 = vor.u32 1.1754944e-38, %v298_v31  ;;  %vm297_vm13 = vcmp.eq.f32.partialorder %v296_v35, 8.507059e+37 }
 0x161   :  { %v1386_v20 = vpop.eup %1385 }
 0x162   :  { %v288_v27 = vmul.f32 %v1386_v20, %v286_v19  ;;  %vm293_vm10 = vweird.f32 %v1386_v20 }
 0x163   :  { %vm294_vm12 = vmor %vm292_vm11, %vm293_vm10 }
 0x164   :  { %v289_v28 = vsub.f32 1.0, %v288_v27 }
 0x166   :  { %v290_v29 = vmul.f32 %v1386_v20, %v289_v28 }
 0x168   :  { %v291_v30 = vadd.f32 %v1386_v20, %v290_v29 }
 0x16a   :  { %v295_v36 = vsel %vm294_vm12, %v1386_v20, %v291_v30 }
 0x16b   :  { %v300_v38 = vsel %vm297_vm13, %v299_v37, %v295_v36 }
 0x1c1   :  { %v312_v39 = vpop.permute.xlu1 %311 }
 0x1c2   :  { %v314_v40 = vmul.f32 %v312_v39, %v300_v38 }
 0x1c4   :  { %316 = vst.msk [vmem:[#allocation2] sm:$0x3] %vm315_vm14, %v314_v40  ;;  %1330 = vmatmul.msk.f32.vlgmr.msrb.gmra.mxu0 %vm206_vm15, %v314_v40  ;;  %1331 = vmatmul.msk.f32.vlgmr.msrb.gmra.mxu1 %vm206_vm15, %v314_v40 }
 0x1c5   :  { %768 = vmatpush.msrb.mxu0 %v1606_v0  ;;  %788 = vmatpush.msrb.mxu1 %v1621_v5 }
 0x1c7   :  { %769 = vmatpush.msrb.mxu0 %v1608_v1  ;;  %789 = vmatpush.msrb.mxu1 %v1650_v13 }
 0x1c9   :  { %770 = vmatpush.msrb.mxu0 %v1612_v2  ;;  %790 = vmatpush.msrb.mxu1 %v1658_v15 }
 0x1cb   :  { %v1087_v41 = vld [vmem:[#allocation2] sm:$0x3]  ;;  %771 = vmatpush.msrb.mxu0 %v1616_v3  ;;  %791 = vmatpush.msrb.mxu1 %v1666_v17 }
 0x1cc   :  { %v1095_v42 = vmax.f32 %v1087_v41, 0.0 }
 0x1cd   :  { %772 = vmatpush.msrb.mxu0 %v1618_v4  ;;  %792 = vmatpush.msrb.mxu1 %v1672_v18 }
 0x1ce   :  { %1123 = vst [vmem:[#allocation1] ss:$4 sm:$0xff] %v1095_v42 }
 0x1cf   :  { %773 = vmatpush.msrb.mxu0 %v1645_v12  ;;  %793 = vmatpush.msrb.mxu1 %v1679_v21 }
 0x1d1   :  { %774 = vmatpush.msrb.mxu0 %v1653_v14  ;;  %794 = vmatpush.msrb.mxu1 %v1685_v22 }
 0x1d3   :  { %775 = vmatpush.msrb.mxu0 %v1661_v16  ;;  %795 = vmatpush.msrb.mxu1 %v1691_v23 }
 0x241   :  { %v357_v24 = vpop.f32.mrf.mxu1  ;;  %v337_v50 = vpop.f32.mrf.mxu0 }
 0x242   :  { %v362_v26 = vrot.slane %v357_v24, 6 }
 0x244   :  { %v363_v52 = vsel %vm164_vm5, %v337_v50, %v362_v26 }
 0x245   :  { %v365_v53 = vadd.f32 %v363_v52, %v168_v51 }
 0x247   :  { %389 = vrot.lane.b32.xlu2 %v365_v53, %s1556_s3  ;;  %v1332_v54 = vmul.f32 -1.442695, %v365_v53  ;;  %v386_v58 = vrot.slane %v365_v53, 2 }
 0x249   :  { %1387 = vpow2.f32 %v1332_v54 }
 0x24f   :  { %v1388_v55 = vpop.eup %1387 }
 0x250   :  { %v369_v56 = vadd.f32 1.0, %v1388_v55  ;;  %v171_v55 = vrot.slane %v1755_v33, 4 }
 0x252   :  { %1389 = vrcp.f32 %v369_v56  ;;  %v381_v61 = vand.u32 2147483648, %v369_v56  ;;  %v379_v6 = vand.u32 2147483647, %v369_v56  ;;  %vm375_vm1 = vweird.f32 %v369_v56 }
 0x253   :  { %1391 = vtanh.f32 %v386_v58 }
 0x254   :  { %v382_v7 = vor.u32 1.1754944e-38, %v381_v61  ;;  %vm380_vm3 = vcmp.eq.f32.partialorder %v379_v6, 8.507059e+37 }
 0x258   :  { %v1390_v57 = vpop.eup %1389 }
 0x259   :  { %v371_v59 = vmul.f32 %v1390_v57, %v369_v56  ;;  %vm376_vm0 = vweird.f32 %v1390_v57  ;;  %v1392_v9 = vpop.eup %1391 }
 0x25a   :  { %vm377_vm2 = vmor %vm375_vm1, %vm376_vm0 }
 0x25b   :  { %v372_v60 = vsub.f32 1.0, %v371_v59 }
 0x25d   :  { %v373_v62 = vmul.f32 %v1390_v57, %v372_v60 }
 0x25f   :  { %v374_v32 = vadd.f32 %v1390_v57, %v373_v62 }
 0x261   :  { %v378_v8 = vsel %vm377_vm2, %v1390_v57, %v374_v32 }
 0x262   :  { %v383_v10 = vsel %vm380_vm3, %v382_v7, %v378_v8 }
 0x263   :  { %v413_v11 = vmul.f32 %v1392_v9, %v383_v10  ;;  %v412_v19 = vmul.f32 %v383_v10, %v1776_v63 }
 0x265   :  { %415 = vrot.lane.b32.xlu1 %v413_v11, %s1556_s3 }
 0x2a1   :  { %v390_v29 = vpop.permute.xlu2 %389 }
 0x2a2   :  { %v391_v30 = vrot.slane %v390_v29, 2 }
 0x2a4   :  { %v1333_v31 = vmul.f32 -1.442695, %v391_v30 }
 0x2d7   :  { %v416_v20 = vpop.permute.xlu1 %415 }
 0x2d8   :  { %v1829_v27 = vadd.f32 %v416_v20, %v412_v19 }
 0x2da   :  { %1393 = vtanh.f32 %v1829_v27 }
 0x2db   :  { %1395 = vpow2.f32 %v1333_v31 }
 0x2e0   :  { %v1394_v28 = vpop.eup %1393 }
 0x2e1   :  { %421 = vrot.lane.b32.xlu2 %v1394_v28, %s1556_s3  ;;  %v1396_v35 = vpop.eup %1395 }
 0x2e2   :  { %v396_v36 = vadd.f32 1.0, %v1396_v35 }
 0x2e4   :  { %1397 = vrcp.f32 %v396_v36  ;;  %v408_v41 = vand.u32 2147483648, %v396_v36  ;;  %vm402_vm6 = vweird.f32 %v396_v36  ;;  %v406_v42 = vand.u32 2147483647, %v396_v36 }
 0x2e6   :  { %v409_v44 = vor.u32 1.1754944e-38, %v408_v41  ;;  %vm407_vm8 = vcmp.eq.f32.partialorder %v406_v42, 8.507059e+37 }
 0x2ea   :  { %v1398_v37 = vpop.eup %1397 }
 0x2eb   :  { %v398_v38 = vmul.f32 %v1398_v37, %v396_v36  ;;  %vm403_vm4 = vweird.f32 %v1398_v37 }
 0x2ec   :  { %vm404_vm7 = vmor %vm402_vm6, %vm403_vm4 }
 0x2ed   :  { %v399_v39 = vsub.f32 1.0, %v398_v38 }
 0x2ef   :  { %v400_v40 = vmul.f32 %v1398_v37, %v399_v39 }
 0x2f1   :  { %v401_v63 = vadd.f32 %v1398_v37, %v400_v40 }
 0x2f3   :  { %v405_v43 = vsel %vm404_vm7, %v1398_v37, %v401_v63 }
 0x2f4   :  { %v410_v45 = vsel %vm407_vm8, %v409_v44, %v405_v43 }
 0x33b   :  { %v422_v24 = vpop.permute.xlu2 %421 }
 0x33c   :  { %v424_v26 = vmul.f32 %v422_v24, %v410_v45 }
 0x33e   :  { %426 = vst.msk [vmem:[#allocation2 + $0x2] sm:$0x3] %vm315_vm14, %v424_v26  ;;  %1334 = vmatmul.msk.f32.vlgmr.msra.gmra.mxu2 %vm206_vm15, %v424_v26  ;;  %1335 = vmatmul.msk.f32.vlgmr.msra.gmra.mxu3 %vm206_vm15, %v424_v26 }
 0x33f   :  { %878 = vmatpush.msra.mxu2 %v1606_v0  ;;  %898 = vmatpush.msra.mxu3 %v1621_v5 }
 0x341   :  { %879 = vmatpush.msra.mxu2 %v1608_v1  ;;  %899 = vmatpush.msra.mxu3 %v1650_v13 }
 0x343   :  { %880 = vmatpush.msra.mxu2 %v1612_v2  ;;  %900 = vmatpush.msra.mxu3 %v1658_v15 }
 0x345   :  { %v1088_v50 = vld [vmem:[#allocation2 + $0x2] sm:$0x3]  ;;  %881 = vmatpush.msra.mxu2 %v1616_v3  ;;  %901 = vmatpush.msra.mxu3 %v1666_v17 }
 0x346   :  { %v1096_v51 = vmax.f32 %v1088_v50, 0.0 }
 0x347   :  { %882 = vmatpush.msra.mxu2 %v1618_v4  ;;  %902 = vmatpush.msra.mxu3 %v1672_v18 }
 0x348   :  { %1125 = vst [vmem:[#allocation1 + $0x1] ss:$4 sm:$0xff] %v1096_v51 }
 0x349   :  { %883 = vmatpush.msra.mxu2 %v1645_v12  ;;  %903 = vmatpush.msra.mxu3 %v1679_v21 }
 0x34b   :  { %884 = vmatpush.msra.mxu2 %v1653_v14  ;;  %904 = vmatpush.msra.mxu3 %v1685_v22 }
 0x34d   :  { %885 = vmatpush.msra.mxu2 %v1661_v16  ;;  %905 = vmatpush.msra.mxu3 %v1691_v23 }
 0x3c1   :  { %v467_v52 = vpop.f32.mrf.mxu3  ;;  %v447_v54 = vpop.f32.mrf.mxu2 }
 0x3c2   :  { %v472_v53 = vrot.slane %v467_v52, 6 }
 0x3c4   :  { %v473_v56 = vsel %vm164_vm5, %v447_v54, %v472_v53 }
 0x3c5   :  { %v475_v57 = vadd.f32 %v473_v56, %v171_v55 }
 0x3c7   :  { %499 = vrot.lane.b32.xlu1 %v475_v57, %s1556_s3  ;;  %v1336_v58 = vmul.f32 -1.442695, %v475_v57  ;;  %v496_v62 = vrot.slane %v475_v57, 2 }
 0x3c9   :  { %1399 = vpow2.f32 %v1336_v58 }
 0x3cf   :  { %v1400_v59 = vpop.eup %1399 }
 0x3d0   :  { %v479_v60 = vadd.f32 1.0, %v1400_v59 }
 0x3d2   :  { %1401 = vrcp.f32 %v479_v60  ;;  %v491_v7 = vand.u32 2147483648, %v479_v60  ;;  %v489_v9 = vand.u32 2147483647, %v479_v60  ;;  %vm485_vm10 = vweird.f32 %v479_v60 }
 0x3d3   :  { %1403 = vtanh.f32 %v496_v62 }
 0x3d4   :  { %v492_v10 = vor.u32 1.1754944e-38, %v491_v7  ;;  %vm490_vm12 = vcmp.eq.f32.partialorder %v489_v9, 8.507059e+37 }
 0x3d8   :  { %v1402_v61 = vpop.eup %1401 }
 0x3d9   :  { %v481_v6 = vmul.f32 %v1402_v61, %v479_v60  ;;  %vm486_vm9 = vweird.f32 %v1402_v61  ;;  %v1404_v19 = vpop.eup %1403 }
 0x3da   :  { %vm487_vm11 = vmor %vm485_vm10, %vm486_vm9 }
 0x3db   :  { %v482_v32 = vsub.f32 1.0, %v481_v6 }
 0x3dd   :  { %v483_v8 = vmul.f32 %v1402_v61, %v482_v32 }
 0x3df   :  { %v484_v33 = vadd.f32 %v1402_v61, %v483_v8 }
 0x3e1   :  { %v488_v11 = vsel %vm487_vm11, %v1402_v61, %v484_v33 }
 0x3e2   :  { %v493_v20 = vsel %vm490_vm12, %v492_v10, %v488_v11 }
 0x3e3   :  { %v523_v28 = vmul.f32 %v1404_v19, %v493_v20  ;;  %v522_v29 = vmul.f32 %v493_v20, %v1829_v27 }
 0x3e5   :  { %525 = vrot.lane.b32.xlu0 %v523_v28, %s1556_s3 }
 0x439   :  { %v500_v36 = vpop.permute.xlu1 %499 }
 0x43a   :  { %v501_v37 = vrot.slane %v500_v36, 2 }
 0x43c   :  { %v1337_v38 = vmul.f32 -1.442695, %v501_v37 }
 0x457   :  { %v526_v30 = vpop.permute.xlu0 %525 }
 0x458   :  { %v1857_v31 = vadd.f32 %v526_v30, %v522_v29 }
 0x45a   :  { %1405 = vtanh.f32 %v1857_v31 }
 0x45b   :  { %1407 = vpow2.f32 %v1337_v38 }
 0x460   :  { %v1406_v35 = vpop.eup %1405 }
 0x461   :  { %531 = vrot.lane.b32.xlu2 %v1406_v35, %s1556_s3  ;;  %v1408_v39 = vpop.eup %1407 }
 0x462   :  { %v506_v40 = vadd.f32 1.0, %v1408_v39 }
 0x464   :  { %1409 = vrcp.f32 %v506_v40  ;;  %v518_v44 = vand.u32 2147483648, %v506_v40  ;;  %vm512_vm0 = vweird.f32 %v506_v40  ;;  %v516_v45 = vand.u32 2147483647, %v506_v40 }
 0x466   :  { %v519_v26 = vor.u32 1.1754944e-38, %v518_v44  ;;  %vm517_vm2 = vcmp.eq.f32.partialorder %v516_v45, 8.507059e+37 }
 0x46a   :  { %v1410_v63 = vpop.eup %1409 }
 0x46b   :  { %v508_v41 = vmul.f32 %v1410_v63, %v506_v40  ;;  %vm513_vm13 = vweird.f32 %v1410_v63 }
 0x46c   :  { %vm514_vm1 = vmor %vm512_vm0, %vm513_vm13 }
 0x46d   :  { %v509_v42 = vsub.f32 1.0, %v508_v41 }
 0x46f   :  { %v510_v43 = vmul.f32 %v1410_v63, %v509_v42 }
 0x471   :  { %v511_v27 = vadd.f32 %v1410_v63, %v510_v43  ;;  %v175_v43 = vsel %vm164_vm5, %v1805_v46, %v1807_v47 }
 0x473   :  { %v515_v24 = vsel %vm514_vm1, %v1410_v63, %v511_v27 }
 0x474   :  { %v520_v50 = vsel %vm517_vm2, %v519_v26, %v515_v24 }
 0x4bb   :  { %v532_v51 = vpop.permute.xlu2 %531 }
 0x4bc   :  { %v534_v52 = vmul.f32 %v532_v51, %v520_v50 }
 0x4be   :  { %536 = vst.msk [vmem:[#allocation2 + $0x4] sm:$0x3] %vm315_vm14, %v534_v52  ;;  %1338 = vmatmul.msk.f32.vlgmr.msra.gmra.mxu0 %vm206_vm15, %v534_v52  ;;  %1339 = vmatmul.msk.f32.vlgmr.msra.gmra.mxu1 %vm206_vm15, %v534_v52 }
 0x4bf   :  { %988 = vmatpush.msra.mxu0 %v1606_v0  ;;  %1008 = vmatpush.msra.mxu1 %v1621_v5 }
 0x4c1   :  { %989 = vmatpush.msra.mxu0 %v1608_v1  ;;  %1009 = vmatpush.msra.mxu1 %v1650_v13 }
 0x4c3   :  { %990 = vmatpush.msra.mxu0 %v1612_v2  ;;  %1010 = vmatpush.msra.mxu1 %v1658_v15 }
 0x4c5   :  { %v1089_v53 = vld [vmem:[#allocation2 + $0x4] sm:$0x3]  ;;  %991 = vmatpush.msra.mxu0 %v1616_v3  ;;  %1011 = vmatpush.msra.mxu1 %v1666_v17  ;;  %v174_v3 = vrot.slane %v1758_v34, 6 }
 0x4c6   :  { %v1097_v54 = vmax.f32 %v1089_v53, 0.0 }
 0x4c7   :  { %992 = vmatpush.msra.mxu0 %v1618_v4  ;;  %1012 = vmatpush.msra.mxu1 %v1672_v18 }
 0x4c8   :  { %1127 = vst [vmem:[#allocation1 + $0x2] ss:$4 sm:$0xff] %v1097_v54 }
 0x4c9   :  { %993 = vmatpush.msra.mxu0 %v1645_v12  ;;  %1013 = vmatpush.msra.mxu1 %v1679_v21 }
 0x4cb   :  { %994 = vmatpush.msra.mxu0 %v1653_v14  ;;  %1014 = vmatpush.msra.mxu1 %v1685_v22 }
 0x4cd   :  { %995 = vmatpush.msra.mxu0 %v1661_v16  ;;  %1015 = vmatpush.msra.mxu1 %v1691_v23 }
 0x53b   :  { %v577_v0 = vpop.f32.mrf.mxu1  ;;  %v557_v2 = vpop.f32.mrf.mxu0 }
 0x53c   :  { %v582_v1 = vrot.slane %v577_v0, 6 }
 0x53e   :  { %v583_v4 = vsel %vm164_vm5, %v557_v2, %v582_v1 }
 0x53f   :  { %v585_v5 = vadd.f32 %v583_v4, %v174_v3 }
 0x541   :  { %609 = vrot.lane.b32.xlu1 %v585_v5, %s1556_s3  ;;  %v1340_v12 = vmul.f32 -1.442695, %v585_v5  ;;  %v606_v17 = vrot.slane %v585_v5, 2 }
 0x543   :  { %1411 = vpow2.f32 %v1340_v12 }
 0x549   :  { %v1412_v13 = vpop.eup %1411 }
 0x54a   :  { %v589_v14 = vadd.f32 1.0, %v1412_v13 }
 0x54c   :  { %1413 = vrcp.f32 %v589_v14  ;;  %v601_v21 = vand.u32 2147483648, %v589_v14  ;;  %v599_v23 = vand.u32 2147483647, %v589_v14  ;;  %vm595_vm4 = vweird.f32 %v589_v14 }
 0x54d   :  { %1415 = vtanh.f32 %v606_v17 }
 0x54e   :  { %v602_v55 = vor.u32 1.1754944e-38, %v601_v21  ;;  %vm600_vm7 = vcmp.eq.f32.partialorder %v599_v23, 8.507059e+37 }
 0x552   :  { %v1414_v15 = vpop.eup %1413 }
 0x553   :  { %v591_v16 = vmul.f32 %v1414_v15, %v589_v14  ;;  %vm596_vm3 = vweird.f32 %v1414_v15  ;;  %v1416_v57 = vpop.eup %1415 }
 0x554   :  { %vm597_vm6 = vmor %vm595_vm4, %vm596_vm3 }
 0x555   :  { %v592_v18 = vsub.f32 1.0, %v591_v16 }
 0x557   :  { %v593_v22 = vmul.f32 %v1414_v15, %v592_v18 }
 0x559   :  { %v594_v34 = vadd.f32 %v1414_v15, %v593_v22 }
 0x55b   :  { %v598_v56 = vsel %vm597_vm6, %v1414_v15, %v594_v34 }
 0x55c   :  { %v603_v58 = vsel %vm600_vm7, %v602_v55, %v598_v56 }
 0x55d   :  { %v633_v59 = vmul.f32 %v1416_v57, %v603_v58  ;;  %v632_v60 = vmul.f32 %v603_v58, %v1857_v31 }
 0x55f   :  { %635 = vrot.lane.b32.xlu0 %v633_v59, %s1556_s3 }
 0x5b3   :  { %v610_v32 = vpop.permute.xlu1 %609 }
 0x5b4   :  { %v611_v7 = vrot.slane %v610_v32, 2 }
 0x5b6   :  { %v1341_v8 = vmul.f32 -1.442695, %v611_v7 }
 0x5d1   :  { %v636_v61 = vpop.permute.xlu0 %635 }
 0x5d2   :  { %v1885_v62 = vadd.f32 %v636_v61, %v632_v60 }
 0x5d4   :  { %1417 = vtanh.f32 %v1885_v62 }
 0x5d5   :  { %1419 = vpow2.f32 %v1341_v8 }
 0x5da   :  { %v1418_v6 = vpop.eup %1417 }
 0x5db   :  { %641 = vrot.lane.b32.xlu2 %v1418_v6, %s1556_s3  ;;  %v1420_v9 = vpop.eup %1419 }
 0x5dc   :  { %v616_v33 = vadd.f32 1.0, %v1420_v9 }
 0x5de   :  { %1421 = vrcp.f32 %v616_v33  ;;  %v628_v29 = vand.u32 2147483648, %v616_v33  ;;  %vm622_vm9 = vweird.f32 %v616_v33  ;;  %v626_v30 = vand.u32 2147483647, %v616_v33 }
 0x5e0   :  { %v629_v35 = vor.u32 1.1754944e-38, %v628_v29  ;;  %vm627_vm11 = vcmp.eq.f32.partialorder %v626_v30, 8.507059e+37 }
 0x5e4   :  { %v1422_v10 = vpop.eup %1421 }
 0x5e5   :  { %v618_v11 = vmul.f32 %v1422_v10, %v616_v33  ;;  %vm623_vm8 = vweird.f32 %v1422_v10 }
 0x5e6   :  { %vm624_vm10 = vmor %vm622_vm9, %vm623_vm8 }
 0x5e7   :  { %v619_v19 = vsub.f32 1.0, %v618_v11  ;;  %v177_v11 = vrot.slane %v1812_v48, 2 }
 0x5e9   :  { %v620_v20 = vmul.f32 %v1422_v10, %v619_v19 }
 0x5eb   :  { %v621_v28 = vadd.f32 %v1422_v10, %v620_v20 }
 0x5ed   :  { %v625_v31 = vsel %vm624_vm10, %v1422_v10, %v621_v28 }
 0x5ee   :  { %v630_v36 = vsel %vm627_vm11, %v629_v35, %v625_v31 }
 0x635   :  { %v642_v37 = vpop.permute.xlu2 %641 }
 0x636   :  { %v644_v38 = vmul.f32 %v642_v37, %v630_v36 }
 0x638   :  { %646 = vst.msk [vmem:[#allocation2 + $0x6] sm:$0x3] %vm315_vm14, %v644_v38  ;;  %1342 = vmatmul.msk.f32.vlgmr.msrb.gmra.mxu2 %vm206_vm15, %v644_v38  ;;  %1343 = vmatmul.msk.f32.vlgmr.msrb.gmra.mxu3 %vm206_vm15, %v644_v38 }
 0x63f   :  { %v1090_v39 = vld [vmem:[#allocation2 + $0x6] sm:$0x3] }
 0x640   :  { %v1098_v40 = vmax.f32 %v1090_v39, 0.0 }
 0x642   :  { %1129 = vst [vmem:[#allocation1 + $0x3] ss:$4 sm:$0xff] %v1098_v40 }
 0x6bb   :  { %v687_v63 = vpop.f32.mrf.mxu3  ;;  %v667_v42 = vpop.f32.mrf.mxu2 }
 0x6bc   :  { %v692_v41 = vrot.slane %v687_v63, 6 }
 0x6be   :  { %v693_v27 = vsel %vm164_vm5, %v667_v42, %v692_v41 }
 0x6bf   :  { %v695_v44 = vadd.f32 %v693_v27, %v175_v43 }
 0x6c1   :  { %719 = vrot.lane.b32.xlu1 %v695_v44, %s1556_s3  ;;  %v1344_v45 = vmul.f32 -1.442695, %v695_v44  ;;  %v716_v51 = vrot.slane %v695_v44, 2  ;;  %v1110_v44 = vld [vmem:[#allocation6 + $0x38] sm:$0xff] }
 0x6c2   :  { %1152 = vmatpush.msrb.mxu2 %v1110_v44 }
 0x6c3   :  { %1423 = vpow2.f32 %v1344_v45  ;;  %v1109_v45 = vld [vmem:[#allocation6 + $0x30] sm:$0xff] }
 0x6c4   :  { %1153 = vmatpush.msrb.mxu2 %v1109_v45 }
 0x6c9   :  { %v1424_v24 = vpop.eup %1423 }
 0x6ca   :  { %v699_v26 = vadd.f32 1.0, %v1424_v24  ;;  %v1108_v24 = vld [vmem:[#allocation6 + $0x28] sm:$0xff] }
 0x6cb   :  { %1154 = vmatpush.msrb.mxu2 %v1108_v24 }
 0x6cc   :  { %1425 = vrcp.f32 %v699_v26  ;;  %v711_v54 = vand.u32 2147483648, %v699_v26  ;;  %v709_v1 = vand.u32 2147483647, %v699_v26  ;;  %vm705_vm13 = vweird.f32 %v699_v26 }
 0x6cd   :  { %1427 = vtanh.f32 %v716_v51 }
 0x6ce   :  { %v712_v47 = vor.u32 1.1754944e-38, %v711_v54  ;;  %vm710_vm1 = vcmp.eq.f32.partialorder %v709_v1, 8.507059e+37 }
 0x6d2   :  { %v1426_v50 = vpop.eup %1425 }
 0x6d3   :  { %v701_v52 = vmul.f32 %v1426_v50, %v699_v26  ;;  %vm706_vm12 = vweird.f32 %v1426_v50  ;;  %v1428_v3 = vpop.eup %1427 }
 0x6d4   :  { %vm707_vm0 = vmor %vm705_vm13, %vm706_vm12 }
 0x6d5   :  { %v702_v53 = vsub.f32 1.0, %v701_v52 }
 0x6d7   :  { %v703_v0 = vmul.f32 %v1426_v50, %v702_v53 }
 0x6d9   :  { %v704_v46 = vadd.f32 %v1426_v50, %v703_v0 }
 0x6db   :  { %v708_v2 = vsel %vm707_vm0, %v1426_v50, %v704_v46 }
 0x6dc   :  { %v713_v4 = vsel %vm710_vm1, %v712_v47, %v708_v2  ;;  %v1107_v47 = vld [vmem:[#allocation6 + $0x20] sm:$0xff]  ;;  %v1106_v2 = vld [vmem:[#allocation6 + $0x18] sm:$0xff] }
 0x6dd   :  { %v743_v5 = vmul.f32 %v1428_v3, %v713_v4  ;;  %v742_v12 = vmul.f32 %v713_v4, %v1885_v62  ;;  %1155 = vmatpush.msrb.mxu2 %v1107_v47  ;;  %v1105_v3 = vld [vmem:[#allocation6 + $0x10] sm:$0xff]  ;;  %v1104_v4 = vld [vmem:[#allocation6 + $0x8] sm:$0xff] }
 0x6df   :  { %745 = vrot.lane.b32.xlu0 %v743_v5, %s1556_s3  ;;  %1156 = vmatpush.msrb.mxu2 %v1106_v2 }
 0x6e1   :  { %1157 = vmatpush.msrb.mxu2 %v1105_v3  ;;  %v1557_v3 = vmov 0  }
 0x6e2   :  { %1372 = vset.pattern.permute.xlu1 %v1557_v3  ;;  %1371 = vset.pattern.permute.xlu0 %v1557_v3 }
 0x6e3   :  { %1158 = vmatpush.msrb.mxu2 %v1104_v4  ;;  %1373 = vset.pattern.permute.xlu2 %v1557_v3  ;;  %v1937_v4 = vld [vmem:[%s2004_s6] sm:$0x3] }
 0x733   :  { %v720_v17 = vpop.permute.xlu1 %719 }
 0x734   :  { %v721_v16 = vrot.slane %v720_v17, 2 }
 0x736   :  { %v1345_v18 = vmul.f32 -1.442695, %v721_v16 }
 0x751   :  { %v746_v13 = vpop.permute.xlu0 %745 }
 0x752   :  { %v1899_v14 = vadd.f32 %v746_v13, %v742_v12  ;;  %v1103_v12 = vld [vmem:[#allocation6] sm:$0xff] }
 0x753   :  { %1159 = vmatpush.msrb.mxu2 %v1103_v12 }
 0x754   :  { %1429 = vtanh.f32 %v1899_v14 }
 0x755   :  { %1431 = vpow2.f32 %v1345_v18 }
 0x75a   :  { %v1430_v15 = vpop.eup %1429 }
 0x75b   :  { %751 = vrot.lane.b32.xlu2 %v1430_v15, %s1556_s3  ;;  %v1432_v21 = vpop.eup %1431 }
 0x75c   :  { %v726_v22 = vadd.f32 1.0, %v1432_v21 }
 0x75e   :  { %1433 = vrcp.f32 %v726_v22  ;;  %v738_v58 = vand.u32 2147483648, %v726_v22  ;;  %vm732_vm3 = vweird.f32 %v726_v22  ;;  %v736_v59 = vand.u32 2147483647, %v726_v22 }
 0x760   :  { %v739_v61 = vor.u32 1.1754944e-38, %v738_v58  ;;  %vm737_vm6 = vcmp.eq.f32.partialorder %v736_v59, 8.507059e+37 }
 0x764   :  { %v1434_v23 = vpop.eup %1433 }
 0x765   :  { %v728_v34 = vmul.f32 %v1434_v23, %v726_v22  ;;  %vm733_vm2 = vweird.f32 %v1434_v23 }
 0x766   :  { %vm734_vm4 = vmor %vm732_vm3, %vm733_vm2 }
 0x767   :  { %v729_v55 = vsub.f32 1.0, %v728_v34 }
 0x769   :  { %v730_v56 = vmul.f32 %v1434_v23, %v729_v55 }
 0x76b   :  { %v731_v57 = vadd.f32 %v1434_v23, %v730_v56 }
 0x76d   :  { %v735_v60 = vsel %vm734_vm4, %v1434_v23, %v731_v57  ;;  %v1138_v57 = vld.sshfl [vmem:[#allocation1] sm:$0xff pattern:$0x73625140] }
 0x76e   :  { %v740_v62 = vsel %vm737_vm6, %v739_v61, %v735_v60 }
 0x7b5   :  { %v752_v6 = vpop.permute.xlu2 %751 }
 0x7b6   :  { %v754_v32 = vmul.f32 %v752_v6, %v740_v62  ;;  %v179_v62 = vrot.slane %v1817_v49, 4 }
 0x7b8   :  { %756 = vst.msk [vmem:[#allocation2 + $0x8] sm:$0x3] %vm315_vm14, %v754_v32  ;;  %1346 = vmatmul.msk.f32.vlgmr.msrb.gmra.mxu0 %vm206_vm15, %v754_v32  ;;  %1347 = vmatmul.msk.f32.vlgmr.msrb.gmra.mxu1 %vm206_vm15, %v754_v32 }
 0x7bf   :  { %v1091_v7 = vld [vmem:[#allocation2 + $0x8] sm:$0x3] }
 0x7c0   :  { %v1099_v8 = vmax.f32 %v1091_v7, 0.0 }
 0x7c2   :  { %1131 = vst [vmem:[#allocation1 + $0x20] ss:$4 sm:$0xff] %v1099_v8 }
 0x835   :  { %v797_v9 = vpop.f32.mrf.mxu1  ;;  %v777_v10 = vpop.f32.mrf.mxu0 }
 0x836   :  { %v802_v33 = vrot.slane %v797_v9, 6 }
 0x838   :  { %v803_v19 = vsel %vm164_vm5, %v777_v10, %v802_v33 }
 0x839   :  { %v805_v20 = vadd.f32 %v803_v19, %v177_v11 }
 0x83b   :  { %829 = vrot.lane.b32.xlu1 %v805_v20, %s1556_s3  ;;  %v1348_v28 = vmul.f32 -1.442695, %v805_v20  ;;  %v826_v35 = vrot.slane %v805_v20, 2 }
 0x83d   :  { %1435 = vpow2.f32 %v1348_v28 }
 0x843   :  { %v1436_v29 = vpop.eup %1435 }
 0x844   :  { %v809_v30 = vadd.f32 1.0, %v1436_v29 }
 0x846   :  { %1437 = vrcp.f32 %v809_v30  ;;  %v821_v38 = vand.u32 2147483648, %v809_v30  ;;  %v819_v40 = vand.u32 2147483647, %v809_v30  ;;  %vm815_vm8 = vweird.f32 %v809_v30 }
 0x847   :  { %1439 = vtanh.f32 %v826_v35 }
 0x848   :  { %v822_v63 = vor.u32 1.1754944e-38, %v821_v38  ;;  %vm820_vm10 = vcmp.eq.f32.partialorder %v819_v40, 8.507059e+37 }
 0x84c   :  { %v1438_v31 = vpop.eup %1437 }
 0x84d   :  { %v811_v36 = vmul.f32 %v1438_v31, %v809_v30  ;;  %vm816_vm7 = vweird.f32 %v1438_v31  ;;  %v1440_v42 = vpop.eup %1439 }
 0x84e   :  { %vm817_vm9 = vmor %vm815_vm8, %vm816_vm7 }
 0x84f   :  { %v812_v37 = vsub.f32 1.0, %v811_v36 }
 0x851   :  { %v813_v39 = vmul.f32 %v1438_v31, %v812_v37 }
 0x853   :  { %v814_v48 = vadd.f32 %v1438_v31, %v813_v39 }
 0x855   :  { %v818_v41 = vsel %vm817_vm9, %v1438_v31, %v814_v48 }
 0x856   :  { %v823_v43 = vsel %vm820_vm10, %v822_v63, %v818_v41  ;;  %vm1199_vm10 = vcmp.le.s32.totalorder %v1937_v4, 1 }
 0x857   :  { %v853_v27 = vmul.f32 %v1440_v42, %v823_v43  ;;  %v852_v26 = vmul.f32 %v823_v43, %v1899_v14 }
 0x859   :  { %855 = vrot.lane.b32.xlu0 %v853_v27, %s1556_s3 }
 0x8ad   :  { %v830_v53 = vpop.permute.xlu1 %829 }
 0x8ae   :  { %v831_v54 = vrot.slane %v830_v53, 2 }
 0x8b0   :  { %v1349_v0 = vmul.f32 -1.442695, %v831_v54 }
 0x8cb   :  { %v856_v50 = vpop.permute.xlu0 %855 }
 0x8cc   :  { %v1911_v51 = vadd.f32 %v856_v50, %v852_v26 }
 0x8ce   :  { %1441 = vtanh.f32 %v1911_v51 }
 0x8cf   :  { %1443 = vpow2.f32 %v1349_v0 }
 0x8d4   :  { %v1442_v52 = vpop.eup %1441 }
 0x8d5   :  { %861 = vrot.lane.b32.xlu2 %v1442_v52, %s1556_s3  ;;  %v1444_v1 = vpop.eup %1443 }
 0x8d6   :  { %v836_v46 = vadd.f32 1.0, %v1444_v1 }
 0x8d8   :  { %1445 = vrcp.f32 %v836_v46  ;;  %v848_v16 = vand.u32 2147483648, %v836_v46  ;;  %vm842_vm12 = vweird.f32 %v836_v46  ;;  %v846_v18 = vand.u32 2147483647, %v836_v46 }
 0x8da   :  { %v849_v22 = vor.u32 1.1754944e-38, %v848_v16  ;;  %vm847_vm0 = vcmp.eq.f32.partialorder %v846_v18, 8.507059e+37 }
 0x8de   :  { %v1446_v5 = vpop.eup %1445 }
 0x8df   :  { %v838_v13 = vmul.f32 %v1446_v5, %v836_v46  ;;  %vm843_vm11 = vweird.f32 %v1446_v5 }
 0x8e0   :  { %vm844_vm13 = vmor %vm842_vm12, %vm843_vm11 }
 0x8e1   :  { %v839_v14 = vsub.f32 1.0, %v838_v13  ;;  %v1940_v13 = vadd.s32 2, %v1937_v4 }
 0x8e3   :  { %v840_v15 = vmul.f32 %v1446_v5, %v839_v14  ;;  %vm1208_vm11 = vcmp.gt.s32.totalorder %v1940_v13, 1 }
 0x8e4   :  { %vm1216_vm12 = vmand %vm1199_vm10, %vm1208_vm11  ;;  %vm1209_vm10 = vcmp.gt.s32.totalorder %v1940_v13, 2 }
 0x8e5   :  { %v841_v17 = vadd.f32 %v1446_v5, %v840_v15  ;;  %v181_v15 = vrot.slane %v1822_v25, 6 }
 0x8e7   :  { %v845_v21 = vsel %vm844_vm13, %v1446_v5, %v841_v17  ;;  %vm1201_vm13 = vcmp.le.s32.totalorder %v1937_v4, 3 }
 0x8e8   :  { %v850_v23 = vsel %vm847_vm0, %v849_v22, %v845_v21  ;;  %v1224_v21 = vsel %vm1216_vm12, 1, %v1557_v3  ;;  %vm1210_vm0 = vcmp.gt.s32.totalorder %v1940_v13, 3  ;;  %vm1204_vm12 = vcmp.le.s32.totalorder %v1937_v4, 6 }
 0x92f   :  { %v862_v34 = vpop.permute.xlu2 %861 }
 0x930   :  { %v864_v55 = vmul.f32 %v862_v34, %v850_v23 }
 0x932   :  { %866 = vst.msk [vmem:[#allocation2 + $0xa] sm:$0x3] %vm315_vm14, %v864_v55  ;;  %1350 = vmatmul.msk.f32.vlgmr.msra.gmra.mxu2 %vm206_vm15, %v864_v55  ;;  %1351 = vmatmul.msk.f32.vlgmr.msra.gmra.mxu3 %vm206_vm15, %v864_v55 }
 0x939   :  { %v1092_v56 = vld [vmem:[#allocation2 + $0xa] sm:$0x3] }
 0x93a   :  { %v1100_v58 = vmax.f32 %v1092_v56, 0.0  ;;  %1358 = vmatmul.msk.f32.vlgmr.msrb.gmra.mxu2 %vm206_vm15, %v1138_v57 }
 0x93c   :  { %1133 = vst [vmem:[#allocation1 + $0x21] ss:$4 sm:$0xff] %v1100_v58 }
 0x9b5   :  { %v907_v59 = vpop.f32.mrf.mxu3  ;;  %v887_v61 = vpop.f32.mrf.mxu2 }
 0x9b6   :  { %v912_v60 = vrot.slane %v907_v59, 6 }
 0x9b8   :  { %v913_v6 = vsel %vm164_vm5, %v887_v61, %v912_v60 }
 0x9b9   :  { %v915_v32 = vadd.f32 %v913_v6, %v179_v62 }
 0x9bb   :  { %939 = vrot.lane.b32.xlu1 %v915_v32, %s1556_s3  ;;  %v1352_v7 = vmul.f32 -1.442695, %v915_v32  ;;  %v936_v10 = vrot.slane %v915_v32, 2 }
 0x9bd   :  { %1447 = vpow2.f32 %v1352_v7 }
 0x9c3   :  { %v1448_v8 = vpop.eup %1447 }
 0x9c4   :  { %v919_v9 = vadd.f32 1.0, %v1448_v8 }
 0x9c6   :  { %1449 = vrcp.f32 %v919_v9  ;;  %v931_v20 = vand.u32 2147483648, %v919_v9  ;;  %v929_v29 = vand.u32 2147483647, %v919_v9  ;;  %vm925_vm2 = vweird.f32 %v919_v9 }
 0x9c7   :  { %1451 = vtanh.f32 %v936_v10 }
 0x9c8   :  { %v932_v30 = vor.u32 1.1754944e-38, %v931_v20  ;;  %vm930_vm4 = vcmp.eq.f32.partialorder %v929_v29, 8.507059e+37 }
 0x9cc   :  { %v1450_v33 = vpop.eup %1449 }
 0x9cd   :  { %v921_v11 = vmul.f32 %v1450_v33, %v919_v9  ;;  %vm926_vm1 = vweird.f32 %v1450_v33  ;;  %v1452_v35 = vpop.eup %1451 }
 0x9ce   :  { %vm927_vm3 = vmor %vm925_vm2, %vm926_vm1 }
 0x9cf   :  { %v922_v19 = vsub.f32 1.0, %v921_v11 }
 0x9d1   :  { %v923_v28 = vmul.f32 %v1450_v33, %v922_v19 }
 0x9d3   :  { %v924_v49 = vadd.f32 %v1450_v33, %v923_v28 }
 0x9d5   :  { %v928_v31 = vsel %vm927_vm3, %v1450_v33, %v924_v49 }
 0x9d6   :  { %v933_v36 = vsel %vm930_vm4, %v932_v30, %v928_v31 }
 0x9d7   :  { %v963_v37 = vmul.f32 %v1452_v35, %v933_v36  ;;  %v962_v38 = vmul.f32 %v933_v36, %v1911_v51 }
 0x9d9   :  { %965 = vrot.lane.b32.xlu0 %v963_v37, %s1556_s3 }
 0xa2d   :  { %v940_v63 = vpop.permute.xlu1 %939 }
 0xa2e   :  { %v941_v41 = vrot.slane %v940_v63, 2 }
 0xa30   :  { %v1353_v42 = vmul.f32 -1.442695, %v941_v41 }
 0xa4b   :  { %v966_v39 = vpop.permute.xlu0 %965 }
 0xa4c   :  { %v1924_v40 = vadd.f32 %v966_v39, %v962_v38 }
 0xa4e   :  { %1453 = vtanh.f32 %v1924_v40 }
 0xa4f   :  { %1455 = vpow2.f32 %v1353_v42 }
 0xa54   :  { %v1454_v48 = vpop.eup %1453 }
 0xa55   :  { %971 = vrot.lane.b32.xlu2 %v1454_v48, %s1556_s3  ;;  %v1456_v43 = vpop.eup %1455 }
 0xa56   :  { %v946_v27 = vadd.f32 1.0, %v1456_v43 }
 0xa58   :  { %1457 = vrcp.f32 %v946_v27  ;;  %v958_v51 = vand.u32 2147483648, %v946_v27  ;;  %vm952_vm7 = vweird.f32 %v946_v27  ;;  %v956_v52 = vand.u32 2147483647, %v946_v27 }
 0xa5a   :  { %v959_v54 = vor.u32 1.1754944e-38, %v958_v51  ;;  %vm957_vm9 = vcmp.eq.f32.partialorder %v956_v52, 8.507059e+37 }
 0xa5e   :  { %v1458_v44 = vpop.eup %1457 }
 0xa5f   :  { %v948_v45 = vmul.f32 %v1458_v44, %v946_v27  ;;  %vm953_vm6 = vweird.f32 %v1458_v44 }
 0xa60   :  { %vm954_vm8 = vmor %vm952_vm7, %vm953_vm6  ;;  %vm1198_vm6 = vcmp.le.s32.totalorder %v1937_v4, 0  ;;  %vm1207_vm7 = vcmp.gt.s32.totalorder %v1940_v13, 0 }
 0xa61   :  { %v949_v24 = vsub.f32 1.0, %v948_v45 }
 0xa63   :  { %v950_v26 = vmul.f32 %v1458_v44, %v949_v24 }
 0xa65   :  { %v951_v50 = vadd.f32 %v1458_v44, %v950_v26 }
 0xa67   :  { %v955_v53 = vsel %vm954_vm8, %v1458_v44, %v951_v50  ;;  %vm1215_vm8 = vmand %vm1198_vm6, %vm1207_vm7 }
 0xa68   :  { %v960_v0 = vsel %vm957_vm9, %v959_v54, %v955_v53  ;;  %v1223_v9 = vsel %vm1215_vm8, 1, %v1557_v3  ;;  %vm1200_vm9 = vcmp.le.s32.totalorder %v1937_v4, 2  ;;  %vm1205_vm8 = vcmp.le.s32.totalorder %v1937_v4, 7  ;;  %v1374_v53 = vld [vmem:[%s2003_s5] ss:$0 sm:$0xff]  ;;  %v1161_v54 = vpop.f32.mrf.mxu2  ;;  %s1558_s5 = smov 32  }
 0xa69   :  { %vm1217_vm11 = vmand %vm1200_vm9, %vm1209_vm10  ;;  %vm1214_vm9 = vcmp.gt.s32.totalorder %v1940_v13, 7 }
 0xa6a   :  { %v1225_v20 = vsel %vm1217_vm11, 1, %v1557_v3 }
 0xaaf   :  { %v972_v1 = vpop.permute.xlu2 %971 }
 0xab0   :  { %v974_v46 = vmul.f32 %v972_v1, %v960_v0  ;;  %v1162_v0 = vadd.f32 %v1374_v53, %v1161_v54 }
 0xab2   :  { %976 = vst.msk [vmem:[#allocation2 + $0xc] sm:$0x3] %vm315_vm14, %v974_v46  ;;  %1354 = vmatmul.msk.f32.vlgmr.msra.gmra.mxu0 %vm206_vm15, %v974_v46  ;;  %1355 = vmatmul.msk.f32.vlgmr.msra.gmra.mxu1 %vm206_vm15, %v974_v46  ;;  %v1169_v46 = vrot.slane %v1162_v0, 2 }
 0xab9   :  { %v1093_v47 = vld [vmem:[#allocation2 + $0xc] sm:$0x3] }
 0xaba   :  { %v1101_v2 = vmax.f32 %v1093_v47, 0.0 }
 0xabc   :  { %1135 = vst [vmem:[#allocation1 + $0x22] ss:$4 sm:$0xff] %v1101_v2 }
 0xb2f   :  { %v1017_v5 = vpop.f32.mrf.mxu1  ;;  %v997_v14 = vpop.f32.mrf.mxu0 }
 0xb30   :  { %v1022_v12 = vrot.slane %v1017_v5, 6 }
 0xb32   :  { %v1023_v17 = vsel %vm164_vm5, %v997_v14, %v1022_v12  ;;  %vm1218_vm5 = vmand %vm1201_vm13, %vm1210_vm0  ;;  %vm1213_vm13 = vcmp.gt.s32.totalorder %v1940_v13, 6  ;;  %vm1203_vm0 = vcmp.le.s32.totalorder %v1937_v4, 5  ;;  %v1170_v12 = vrot.slane %v1162_v0, 4 }
 0xb33   :  { %v1025_v16 = vadd.f32 %v1023_v17, %v181_v15  ;;  %v1226_v23 = vsel %vm1218_vm5, 1, %v1557_v3  ;;  %vm1212_vm5 = vcmp.gt.s32.totalorder %v1940_v13, 5 }
 0xb35   :  { %1049 = vrot.lane.b32.xlu1 %v1025_v16, %s1556_s3  ;;  %v1356_v18 = vmul.f32 -1.442695, %v1025_v16  ;;  %v1046_v55 = vrot.slane %v1025_v16, 2 }
 0xb37   :  { %1459 = vpow2.f32 %v1356_v18 }
 0xb3d   :  { %v1460_v22 = vpop.eup %1459  ;;  %1235 = vperm.xlu1 %1372, %v1224_v21   ;;  %v1171_v21 = vrot.slane %v1162_v0, 6 }
 0xb3e   :  { %v1029_v25 = vadd.f32 1.0, %v1460_v22  ;;  %v1184_v22 = vsel %vm315_vm14, %v1170_v12, 0.0 }
 0xb40   :  { %1461 = vrcp.f32 %v1029_v25  ;;  %v1041_v58 = vand.u32 2147483648, %v1029_v25  ;;  %v1039_v60 = vand.u32 2147483647, %v1029_v25  ;;  %vm1035_vm2 = vweird.f32 %v1029_v25 }
 0xb41   :  { %1463 = vtanh.f32 %v1046_v55 }
 0xb42   :  { %v1042_v62 = vor.u32 1.1754944e-38, %v1041_v58  ;;  %vm1040_vm4 = vcmp.eq.f32.partialorder %v1039_v60, 8.507059e+37 }
 0xb45   :  { %1241 = vperm.xlu1 %1372, %v1226_v23  }
 0xb46   :  { %v1462_v34 = vpop.eup %1461 }
 0xb47   :  { %v1031_v56 = vmul.f32 %v1462_v34, %v1029_v25  ;;  %vm1036_vm1 = vweird.f32 %v1462_v34  ;;  %v1464_v32 = vpop.eup %1463 }
 0xb48   :  { %vm1037_vm3 = vmor %vm1035_vm2, %vm1036_vm1  ;;  %vm1202_vm2 = vcmp.le.s32.totalorder %v1937_v4, 4  ;;  %v1181_v4 = vsel %vm315_vm14, %v1162_v0, 0.0 }
 0xb49   :  { %v1032_v57 = vsub.f32 1.0, %v1031_v56  ;;  %vm1221_vm1 = vmand %vm1204_vm12, %vm1213_vm13 }
 0xb4a   :  { %v1229_v39 = vsel %vm1221_vm1, 1, %v1557_v3  ;;  %vm1222_vm12 = vmand %vm1205_vm8, %vm1214_vm9  ;;  %vm1298_vm8 = vcmask 261120   ;;  %vm1301_vm9 = vcmask 785408  }
 0xb4b   :  { %v1033_v59 = vmul.f32 %v1462_v34, %v1032_v57  ;;  %v1230_v44 = vsel %vm1222_vm12, 1, %v1557_v3  ;;  %v1186_v57 = vsel %vm315_vm14, %v1171_v21, 0.0 }
 0xb4d   :  { %v1034_v61 = vadd.f32 %v1462_v34, %v1033_v59  ;;  %1250 = vperm.xlu1 %1372, %v1229_v39  }
 0xb4f   :  { %v1038_v6 = vsel %vm1037_vm3, %v1462_v34, %v1034_v61  ;;  %vm1211_vm3 = vcmp.gt.s32.totalorder %v1940_v13, 4 }
 0xb50   :  { %v1043_v7 = vsel %vm1040_vm4, %v1042_v62, %v1038_v6  ;;  %vm1220_vm4 = vmand %vm1203_vm0, %vm1212_vm5 }
 0xb51   :  { %v1073_v8 = vmul.f32 %v1464_v32, %v1043_v7  ;;  %v1072_v33 = vmul.f32 %v1043_v7, %v1924_v40  ;;  %v1228_v40 = vsel %vm1220_vm4, 1, %v1557_v3  ;;  %vm1219_vm7 = vmand %vm1202_vm2, %vm1211_vm3 }
 0xb52   :  { %v1227_v63 = vsel %vm1219_vm7, 1, %v1557_v3  ;;  %v1182_v3 = vsel %vm315_vm14, %v1169_v46, 0.0 }
 0xb53   :  { %1075 = vrot.lane.b32.xlu0 %v1073_v8, %s1556_s3  ;;  %v1183_v13 = vadd.f32 %v1182_v3, %v1181_v4 }
 0xb55   :  { %v1185_v23 = vadd.f32 %v1184_v22, %v1183_v13 }
 0xb57   :  { %v1187_v62 = vadd.f32 %v1186_v57, %v1185_v23 }
 0xb5b   :  { %1232 = vperm.xlu0 %1371, %v1223_v9  }
 0xb63   :  { %1247 = vperm.xlu0 %1371, %v1228_v40  }
 0xba7   :  { %v1050_v28 = vpop.permute.xlu1 %1049 }
 0xba8   :  { %v1051_v29 = vrot.slane %v1050_v28, 2 }
 0xbaa   :  { %v1357_v49 = vmul.f32 -1.442695, %v1051_v29 }
 0xbaf   :  { %v1236_v1 = vpop.permute.xlu1 %1235 }
 0xbb0   :  { %vm1256_vm5 = vcmp.eq.s32.totalorder %v1236_v1, 1 }
 0xbb1   :  { %v1264_v14 = vsel %vm1256_vm5, %v1169_v46, 0.0 }
 0xbb2   :  { %v1272_v25 = vsel %vm315_vm14, %v1264_v14, 0.0 }
 0xbb7   :  { %v1242_v15 = vpop.permute.xlu1 %1241 }
 0xbb8   :  { %vm1258_vm2 = vcmp.eq.s32.totalorder %v1242_v15, 1 }
 0xbb9   :  { %v1266_v58 = vsel %vm1258_vm2, %v1171_v21, 0.0 }
 0xbba   :  { %v1276_v9 = vsel %vm315_vm14, %v1266_v58, 0.0 }
 0xbbf   :  { %v1251_v6 = vpop.permute.xlu1 %1250 }
 0xbc5   :  { %v1076_v10 = vpop.permute.xlu0 %1075 }
 0xbc6   :  { %v1078_v11 = vadd.f32 %v1076_v10, %v1072_v33 }
 0xbc8   :  { %1465 = vtanh.f32 %v1078_v11 }
 0xbc9   :  { %1467 = vpow2.f32 %v1357_v49 }
 0xbcd   :  { %v1233_v47 = vpop.permute.xlu0 %1232 }
 0xbce   :  { %v1466_v19 = vpop.eup %1465  ;;  %vm1255_vm0 = vcmp.eq.s32.totalorder %v1233_v47, 1 }
 0xbcf   :  { %1081 = vrot.lane.b32.xlu2 %v1466_v19, %s1556_s3  ;;  %v1468_v30 = vpop.eup %1467  ;;  %v1263_v5 = vsel %vm1255_vm0, %v1162_v0, 0.0 }
 0xbd0   :  { %v1056_v31 = vadd.f32 1.0, %v1468_v30  ;;  %v1271_v18 = vsel %vm315_vm14, %v1263_v5, 0.0 }
 0xbd1   :  { %v1273_v55 = vadd.f32 %v1272_v25, %v1271_v18 }
 0xbd2   :  { %1469 = vrcp.f32 %v1056_v31  ;;  %vm1062_vm10 = vweird.f32 %v1056_v31  ;;  %v1068_v41 = vand.u32 2147483648, %v1056_v31  ;;  %v1066_v42 = vand.u32 2147483647, %v1056_v31 }
 0xbd4   :  { %v1069_v27 = vor.u32 1.1754944e-38, %v1068_v41  ;;  %vm1067_vm13 = vcmp.eq.f32.partialorder %v1066_v42, 8.507059e+37 }
 0xbd5   :  { %v1248_v60 = vpop.permute.xlu0 %1247 }
 0xbd6   :  { %vm1260_vm4 = vcmp.eq.s32.totalorder %v1248_v60, 1 }
 0xbd7   :  { %1238 = vperm.xlu2 %1373, %v1225_v20  }
 0xbd8   :  { %v1470_v35 = vpop.eup %1469 }
 0xbd9   :  { %v1058_v36 = vmul.f32 %v1470_v35, %v1056_v31  ;;  %vm1063_vm6 = vweird.f32 %v1470_v35 }
 0xbda   :  { %vm1064_vm11 = vmor %vm1062_vm10, %vm1063_vm6  ;;  %vm1261_vm6 = vcmp.eq.s32.totalorder %v1251_v6, 1 }
 0xbdb   :  { %v1059_v37 = vsub.f32 1.0, %v1058_v36 }
 0xbdd   :  { %v1060_v38 = vmul.f32 %v1470_v35, %v1059_v37 }
 0xbdf   :  { %v1061_v48 = vadd.f32 %v1470_v35, %v1060_v38  ;;  %1244 = vperm.xlu2 %1373, %v1227_v63  }
 0xbe1   :  { %v1065_v43 = vsel %vm1064_vm11, %v1470_v35, %v1061_v48 }
 0xbe2   :  { %v1070_v45 = vsel %vm1067_vm13, %v1069_v27, %v1065_v43 }
 0xbe7   :  { %1253 = vperm.xlu2 %1373, %v1230_v44  }
 0xc29   :  { %v1082_v24 = vpop.permute.xlu2 %1081 }
 0xc2a   :  { %v1084_v26 = vmul.f32 %v1082_v24, %v1070_v45 }
 0xc2c   :  { %1086 = vst.msk [vmem:[#allocation2 + $0xe] sm:$0x3] %vm315_vm14, %v1084_v26 }
 0xc31   :  { %v1239_v2 = vpop.permute.xlu2 %1238 }
 0xc32   :  { %vm1257_vm1 = vcmp.eq.s32.totalorder %v1239_v2, 1 }
 0xc33   :  { %v1094_v50 = vld [vmem:[#allocation2 + $0xe] sm:$0x3]  ;;  %v1265_v17 = vsel %vm1257_vm1, %v1170_v12, 0.0 }
 0xc34   :  { %v1102_v51 = vmax.f32 %v1094_v50, 0.0  ;;  %v1274_v34 = vsel %vm315_vm14, %v1265_v17, 0.0 }
 0xc35   :  { %v1275_v59 = vadd.f32 %v1274_v34, %v1273_v55 }
 0xc36   :  { %1137 = vst [vmem:[#allocation1 + $0x23] ss:$4 sm:$0xff] %v1102_v51 }
 0xc37   :  { %v1277_v11 = vadd.f32 %v1276_v9, %v1275_v59 }
 0xc39   :  { %v1245_v16 = vpop.permute.xlu2 %1244 }
 0xc3a   :  { %vm1259_vm3 = vcmp.eq.s32.totalorder %v1245_v16, 1 }
 0xc3d   :  { %v1139_v52 = vld.sshfl [vmem:[#allocation1 + $0x20] sm:$0xff pattern:$0x73625140] }
 0xc3e   :  { %1359 = vmatmul.msk.f32.gmra.mxu2 %vm206_vm15, %v1139_v52 }
 0xc41   :  { %v1254_v19 = vpop.permute.xlu2 %1253 }
 0xc42   :  { %vm1262_vm7 = vcmp.eq.s32.totalorder %v1254_v19, 1 }
 0xcc1   :  { %v1164_v56 = vpop.f32.mrf.mxu2 }
 0xcc2   :  { %v1165_v61 = vadd.f32 %v1374_v53, %v1164_v56 }
 0xcc4   :  { %v1172_v32 = vrot.slane %v1165_v61, 2  ;;  %v1173_v7 = vrot.slane %v1165_v61, 4  ;;  %v1188_v8 = vsel %vm315_vm14, %v1165_v61, 0.0  ;;  %v1267_v10 = vsel %vm1259_vm3, %v1165_v61, 0.0 }
 0xcc5   :  { %v1189_v33 = vadd.f32 %v1188_v8, %v1187_v62  ;;  %v1174_v20 = vrot.slane %v1165_v61, 6  ;;  %v1278_v30 = vsel %vm315_vm14, %v1267_v10, 0.0 }
 0xcc6   :  { %v1190_v28 = vsel %vm315_vm14, %v1172_v32, 0.0  ;;  %v1268_v29 = vsel %vm1260_vm4, %v1172_v32, 0.0  ;;  %v1192_v31 = vsel %vm315_vm14, %v1173_v7, 0.0  ;;  %v1269_v35 = vsel %vm1261_vm6, %v1173_v7, 0.0 }
 0xcc7   :  { %v1191_v49 = vadd.f32 %v1190_v28, %v1189_v33  ;;  %v1279_v36 = vadd.f32 %v1278_v30, %v1277_v11  ;;  %v1280_v37 = vsel %vm315_vm14, %v1268_v29, 0.0  ;;  %v1194_v39 = vsel %vm315_vm14, %v1174_v20, 0.0 }
 0xcc8   :  { %v1270_v40 = vsel %vm1262_vm7, %v1174_v20, 0.0  ;;  %v1282_v41 = vsel %vm315_vm14, %v1269_v35, 0.0 }
 0xcc9   :  { %v1193_v38 = vadd.f32 %v1192_v31, %v1191_v49  ;;  %v1281_v48 = vadd.f32 %v1280_v37, %v1279_v36  ;;  %v1284_v27 = vsel %vm315_vm14, %v1270_v40, 0.0 }
 0xccb   :  { %v1195_v63 = vadd.f32 %v1194_v39, %v1193_v38  ;;  %v1283_v42 = vadd.f32 %v1282_v41, %v1281_v48 }
 0xccd   :  { %v1196_v43 = vmul.f32 0.125, %v1195_v63  ;;  %v1285_v44 = vadd.f32 %v1284_v27, %v1283_v42 }
 0xccf   :  { %1292 = vrot.lane.b32.xlu1 %v1196_v43, %s1558_s5  ;;  %v1286_v45 = vmul.f32 0.5, %v1285_v44 }
 0xcd1   :  { %1295 = vrot.lane.b32.xlu2 %v1286_v45, %s1556_s3  ;;  %1288 = vrot.lane.b32.xlu0 %v1286_v45, %s1558_s5 }
 0xd2b   :  { %v1296_v51 = vpop.permute.xlu2 %1295 }
 0xd41   :  { %v1293_v26 = vpop.permute.xlu1 %1292 }
 0xd43   :  { %v1289_v24 = vpop.permute.xlu0 %1288 }
 0xd44   :  { %v1299_v50 = vsel %vm1298_vm8, %v1196_v43, %v1289_v24 }
 0xd45   :  { %v1300_v52 = vsel %vm206_vm15, %v1299_v50, %v1293_v26 }
 0xd46   :  { %v1302_v53 = vsel %vm1301_vm9, %v1300_v52, %v1296_v51 }
 0xd47   :  { %1303 = vst [vmem:[#allocation8] sm:$0x3] %v1302_v53 }
 0xd48   :  { %1314 = dma.vmem_to_hbm [thread:$0]  %s1310_s14, 32, %s1312_s15, [#allocation5]  }
 0xd49   :  { %1547 = dma.done.wait [#allocation5], 32  }
 0xd4a   :  { %1548 = vsyncadd [#allocation5], 4294967264 }
 0xd4b   :  { %1319 = vsyncpa [#allocation4], 1 }
 0xd4c   :  { %1320 = vsyncpa [#allocation7], 1 }
 0xd4d   :  { %1321 = vsyncpa [#allocation5], 1 }

</bundles_post_ra>
